<compile_context>
chip_gen: v7x
topology: tpu7x:2x2x1
jax: 0.10.0
libtpu: 0.0.40
codegen_flags: <defaults>
</compile_context>

<pallas_src>
import math
import functools

import jax
import jax.numpy as jnp
from jax.experimental import pallas as pl
from jax.experimental.pallas import tpu as pltpu

# ---------------- config (small, consistent with the module) ----------------
BATCH = 2
SEQ = 16
HIDDEN = 128
N_HEADS = 4
N_KV_HEADS = 2
HEAD_DIM = HIDDEN // N_HEADS          # 32
KV_DIM = N_KV_HEADS * HEAD_DIM        # 64
INTERMEDIATE = 256
ROPE_THETA = 10000.0
RMS_EPS = 1e-6
N_REP = N_HEADS // N_KV_HEADS
QKV_W = 2 * HIDDEN + 3 * KV_DIM       # [q | k | v | rot(q) | rot(k)] = 448


# ------------------------------ Pallas kernel -------------------------------
def _decoder_layer_kernel(
    x_ref, cos_ref, sin_ref,
    ln1_ref, wqkv_ref, bqkv_ref, wo_ref,
    ln2_ref, wgu_ref, wd_ref,
    o_ref,
    *, bb,
):
    S, H, KV, hd = SEQ, HIDDEN, KV_DIM, HEAD_DIM
    nh, nrep, I = N_HEADS, N_REP, INTERMEDIATE
    eps = RMS_EPS
    bf16 = jnp.bfloat16

    x = x_ref[...]                                            # (bb*S, H) f32

    # ---- input_layernorm (RMSNorm, f32) ----
    var = jnp.mean(x * x, axis=-1, keepdims=True)
    xn = x * jax.lax.rsqrt(var + eps) * ln1_ref[...]

    # ---- fused QKV (+ pre-rotated q/k columns), bf16 x bf16 -> f32 acc ----
    qkv = jnp.dot(xn.astype(bf16), wqkv_ref[...],
                  preferred_element_type=jnp.float32) + bqkv_ref[...]
    qk = qkv[:, :H + KV]                                      # [q | k]
    v = qkv[:, H + KV:H + 2 * KV]                             # (rows, KV)
    qk_rot = qkv[:, H + 2 * KV:]                              # [rot_half(q) | rot_half(k)]

    # ---- RoPE, full lane width (cos/sin pre-tiled per head in wrapper) ----
    qke = qk * cos_ref[...] + qk_rot * sin_ref[...]
    qe = qke[:, :H]                                           # (rows, H)
    ke = qke[:, H:]                                           # (rows, KV)

    # ---- causal SDPA, per batch item / query head (GQA: kv head = h // n_rep)
    scale = 1.0 / math.sqrt(hd)
    row = jax.lax.broadcasted_iota(jnp.int32, (S, S), 0)
    col = jax.lax.broadcasted_iota(jnp.int32, (S, S), 1)
    causal = row >= col

    attn_rows = []
    for b in range(bb):
        qb = qe[b * S:(b + 1) * S, :]                         # (S, H)
        kbT = ke[b * S:(b + 1) * S, :].T                      # (KV, S): one transpose / batch
        vb = v[b * S:(b + 1) * S, :]                          # (S, KV)
        heads = []
        for h in range(nh):
            g = h // nrep
            s = jnp.dot(qb[:, h * hd:(h + 1) * hd],
                        kbT[g * hd:(g + 1) * hd, :],
                        preferred_element_type=jnp.float32) * scale
            s = jnp.where(causal, s, -1e30)
            p = jnp.exp(s - jnp.max(s, axis=-1, keepdims=True))
            p = p * pl.reciprocal(jnp.sum(p, axis=-1, keepdims=True), approx=True)
            heads.append(jnp.dot(p, vb[:, g * hd:(g + 1) * hd],
                                 preferred_element_type=jnp.float32))
        attn_rows.append(jnp.concatenate(heads, axis=-1))     # (S, H), lane-dense
    attn = attn_rows[0] if bb == 1 else jnp.concatenate(attn_rows, axis=0)

    # ---- o_proj + residual ----
    x2 = x + jnp.dot(attn.astype(bf16), wo_ref[...],
                     preferred_element_type=jnp.float32)

    # ---- post_attention_layernorm (RMSNorm, f32) ----
    var2 = jnp.mean(x2 * x2, axis=-1, keepdims=True)
    xn2 = x2 * jax.lax.rsqrt(var2 + eps) * ln2_ref[...]

    # ---- fused SwiGLU MLP: down(silu(gate) * up) + residual ----
    gu = jnp.dot(xn2.astype(bf16), wgu_ref[...],
                 preferred_element_type=jnp.float32)          # (rows, 2*I)
    gate = gu[:, :I]
    up = gu[:, I:]
    act = gate * jax.nn.sigmoid(gate) * up                    # SiLU(gate) * up, f32
    o_ref[...] = x2 + jnp.dot(act.astype(bf16), wd_ref[...],
                              preferred_element_type=jnp.float32)


# --------------------------------- wrapper ----------------------------------
def _default_batch_per_step(B):
    # v7x has two TensorCores per chip: keep the batch as a parallel grid axis
    # so the two batch items land on different cores. Single-TC v5e/v6e:
    # collapse the whole batch into one grid step (M=B*S rows per matmul, one
    # fewer ~0.35us grid-step overhead).
    try:
        kind = jax.devices()[0].device_kind.lower()
        if "v7" in kind or "7x" in kind:
            return 1
    except Exception:
        pass
    return B


def qwen2_decoder_layer(x, params, batch_per_step=None):
    B, S, H = x.shape
    assert (S, H) == (SEQ, HIDDEN)
    hd, hd2, KV, I = HEAD_DIM, HEAD_DIM // 2, KV_DIM, INTERMEDIATE
    bf16 = jnp.bfloat16

    # ---- build the per-head half-swap matrix R so that q @ R = rotate_half(q)
    eye = jnp.eye(hd2, dtype=jnp.float32)
    zer = jnp.zeros((hd2, hd2), jnp.float32)
    Rh = jnp.concatenate(
        [jnp.concatenate([zer, eye], axis=1),
         jnp.concatenate([-eye, zer], axis=1)], axis=0)            # (hd, hd)
    Rq = jnp.kron(jnp.eye(N_HEADS, dtype=jnp.float32), Rh)         # (H, H)
    Rk = jnp.kron(jnp.eye(N_KV_HEADS, dtype=jnp.float32), Rh)      # (KV, KV)

    # ---- fuse weights: [Wq | Wk | Wv | Wq@R | Wk@R], bf16 for the MXU ----
    wqkv = jnp.concatenate(
        [params["wq"], params["wk"], params["wv"],
         params["wq"] @ Rq, params["wk"] @ Rk], axis=1).astype(bf16)   # (H, 448)
    bqkv = jnp.concatenate(
        [params["bq"], params["bk"], params["bv"],
         params["bq"] @ Rq, params["bk"] @ Rk], axis=1)                # (1, 448) f32
    wo = params["wo"].astype(bf16)                                     # (H, H)
    wgu = jnp.concatenate([params["wg"], params["wu"]], axis=1).astype(bf16)  # (H, 2I)
    wd = params["wd"].astype(bf16)                                     # (I, H)

    # ---- lane-dense cos/sin tables tiled per head and per batch item ----
    cos_h = jnp.concatenate([params["cos"], params["cos"]], axis=1)    # (S, hd)
    sin_h = jnp.concatenate([params["sin"], params["sin"]], axis=1)
    cos_qk = jnp.concatenate(
        [jnp.tile(cos_h, (1, N_HEADS)), jnp.tile(cos_h, (1, N_KV_HEADS))], axis=1)
    sin_qk = jnp.concatenate(
        [jnp.tile(sin_h, (1, N_HEADS)), jnp.tile(sin_h, (1, N_KV_HEADS))], axis=1)
    cos_tab = jnp.tile(cos_qk, (B, 1))                                 # (B*S, H+KV)
    sin_tab = jnp.tile(sin_qk, (B, 1))

    bb = batch_per_step if batch_per_step is not None else _default_batch_per_step(B)
    assert B % bb == 0
    rows = bb * S
    x_flat = x.reshape(B * S, H)

    rowspec = lambda w: pl.BlockSpec((rows, w), lambda i: (i, 0))
    full = lambda shape: pl.BlockSpec(shape, lambda i: (0, 0))

    in_specs = [
        rowspec(H),              # x
        rowspec(H + KV),         # cos table
        rowspec(H + KV),         # sin table
        full((1, H)),            # ln1 weight
        full((H, QKV_W)),        # fused Wqkv(+rot)
        full((1, QKV_W)),        # fused bias
        full((H, H)),            # Wo
        full((1, H)),            # ln2 weight
        full((H, 2 * I)),        # fused Wgate|Wup
        full((I, H)),            # Wdown
    ]

    fn = pl.pallas_call(
        functools.partial(_decoder_layer_kernel, bb=bb),
        out_shape=jax.ShapeDtypeStruct((B * S, H), jnp.float32),
        grid=(B // bb,),
        in_specs=in_specs,
        out_specs=rowspec(H),
        compiler_params=pltpu.CompilerParams(
            dimension_semantics=("parallel",)),
    )
    out_flat = fn(x_flat, cos_tab, sin_tab,
                  params["ln1"], wqkv, bqkv, wo,
                  params["ln2"], wgu, wd)
    return out_flat.reshape(B, S, H)


# ----------------------------- pure-JAX reference ----------------------------
def reference(x, p):
    B, S, H = x.shape
    hd, nh, nkv, nrep = HEAD_DIM, N_HEADS, N_KV_HEADS, N_REP

    def rms(h, w):
        v = jnp.mean(h * h, axis=-1, keepdims=True)
        return h * jax.lax.rsqrt(v + RMS_EPS) * w

    xn = rms(x, p["ln1"][0])
    q = xn @ p["wq"] + p["bq"][0]
    k = xn @ p["wk"] + p["bk"][0]
    v = xn @ p["wv"] + p["bv"][0]

    q = q.reshape(B, S, nh, hd).transpose(0, 2, 1, 3)
    k = k.reshape(B, S, nkv, hd).transpose(0, 2, 1, 3)
    v = v.reshape(B, S, nkv, hd).transpose(0, 2, 1, 3)

    cosf = jnp.concatenate([p["cos"], p["cos"]], -1)[None, None]
    sinf = jnp.concatenate([p["sin"], p["sin"]], -1)[None, None]

    def rot(t):
        return jnp.concatenate([-t[..., hd // 2:], t[..., :hd // 2]], -1)

    qe = q * cosf + rot(q) * sinf
    ke = k * cosf + rot(k) * sinf
    ke = jnp.repeat(ke, nrep, axis=1)
    ve = jnp.repeat(v, nrep, axis=1)

    s = jnp.einsum("bhqd,bhkd->bhqk", qe, ke) / math.sqrt(hd)
    causal = jnp.tril(jnp.ones((S, S), dtype=bool))
    s = jnp.where(causal[None, None], s, -1e30)
    pw = jax.nn.softmax(s, axis=-1)
    o = jnp.einsum("bhqk,bhkd->bhqd", pw, ve)
    o = o.transpose(0, 2, 1, 3).reshape(B, S, H) @ p["wo"]
    x2 = x + o

    xn2 = rms(x2, p["ln2"][0])
    g = jax.nn.silu(xn2 @ p["wg"])
    u = xn2 @ p["wu"]
    return x2 + (g * u) @ p["wd"]


# ------------------------------ param / rope init ----------------------------
def make_params(key):
    ks = jax.random.split(key, 10)
    std = 0.02
    params = {
        "ln1": jnp.ones((1, HIDDEN), jnp.float32),
        "ln2": jnp.ones((1, HIDDEN), jnp.float32),
        "wq": std * jax.random.normal(ks[0], (HIDDEN, HIDDEN), jnp.float32),
        "bq": std * jax.random.normal(ks[1], (1, HIDDEN), jnp.float32),
        "wk": std * jax.random.normal(ks[2], (HIDDEN, KV_DIM), jnp.float32),
        "bk": std * jax.random.normal(ks[3], (1, KV_DIM), jnp.float32),
        "wv": std * jax.random.normal(ks[4], (HIDDEN, KV_DIM), jnp.float32),
        "bv": std * jax.random.normal(ks[5], (1, KV_DIM), jnp.float32),
        "wo": std * jax.random.normal(ks[6], (HIDDEN, HIDDEN), jnp.float32),
        "wg": std * jax.random.normal(ks[7], (HIDDEN, INTERMEDIATE), jnp.float32),
        "wu": std * jax.random.normal(ks[8], (HIDDEN, INTERMEDIATE), jnp.float32),
        "wd": std * jax.random.normal(ks[9], (INTERMEDIATE, HIDDEN), jnp.float32),
    }
    # rotary cache (position_ids = arange(S))
    inv_freq = 1.0 / (ROPE_THETA ** (jnp.arange(0, HEAD_DIM, 2, dtype=jnp.float32) / HEAD_DIM))
    t = jnp.arange(SEQ, dtype=jnp.float32)
    freqs = jnp.outer(t, inv_freq)           # (S, HEAD_DIM/2)
    params["cos"] = jnp.cos(freqs)
    params["sin"] = jnp.sin(freqs)
    return params


if __name__ == "__main__":
    key = jax.random.PRNGKey(0)
    k_x, k_p = jax.random.split(key)
    x = jax.random.normal(k_x, (BATCH, SEQ, HIDDEN), jnp.float32)
    params = make_params(k_p)

    out = qwen2_decoder_layer(x, params)
    out = jax.block_until_ready(out)

    ref = jax.block_until_ready(reference(x, params))
    assert out.shape == (BATCH, SEQ, HIDDEN)
    assert bool(jnp.all(jnp.isfinite(out)))
    assert bool(jnp.allclose(out, ref, atol=2e-2, rtol=2e-2)), (
        float(jnp.max(jnp.abs(out - ref))))

    print("KERNEL_OK")
</pallas_src>

<mosaic_0001>
module attributes {stable_mosaic.version = 11 : i64} {
  func.func @_decoder_layer_kernel(%arg0: i32, %arg1: memref<32x128xf32, #tpu.memory_space<vmem>>, %arg2: memref<32x192xf32, #tpu.memory_space<vmem>>, %arg3: memref<32x192xf32, #tpu.memory_space<vmem>>, %arg4: memref<1x128xf32, #tpu.memory_space<vmem>>, %arg5: memref<128x448xbf16, #tpu.memory_space<vmem>>, %arg6: memref<1x448xf32, #tpu.memory_space<vmem>>, %arg7: memref<128x128xbf16, #tpu.memory_space<vmem>>, %arg8: memref<1x128xf32, #tpu.memory_space<vmem>>, %arg9: memref<128x512xbf16, #tpu.memory_space<vmem>>, %arg10: memref<256x128xbf16, #tpu.memory_space<vmem>>, %arg11: memref<32x128xf32, #tpu.memory_space<vmem>>) attributes {dimension_semantics = [#tpu.dimension_semantics<parallel>], iteration_bounds = array<i64: 1>, scalar_prefetch = 0 : i64, scratch_operands = 0 : i64, tpu.core_type = #tpu.core_type<tc>, window_params = [{transform_indices = @transform_0, window_bounds = array<i64: 32, 128>}, {transform_indices = @transform_1, window_bounds = array<i64: 32, 192>}, {transform_indices = @transform_2, window_bounds = array<i64: 32, 192>}, {pipeline_mode = #tpu.pipeline_mode<synchronous>, transform_indices = @transform_3, window_bounds = array<i64: 1, 128>}, {pipeline_mode = #tpu.pipeline_mode<synchronous>, transform_indices = @transform_4, window_bounds = array<i64: 128, 448>}, {pipeline_mode = #tpu.pipeline_mode<synchronous>, transform_indices = @transform_5, window_bounds = array<i64: 1, 448>}, {pipeline_mode = #tpu.pipeline_mode<synchronous>, transform_indices = @transform_6, window_bounds = array<i64: 128, 128>}, {pipeline_mode = #tpu.pipeline_mode<synchronous>, transform_indices = @transform_7, window_bounds = array<i64: 1, 128>}, {pipeline_mode = #tpu.pipeline_mode<synchronous>, transform_indices = @transform_8, window_bounds = array<i64: 128, 512>}, {pipeline_mode = #tpu.pipeline_mode<synchronous>, transform_indices = @transform_9, window_bounds = array<i64: 256, 128>}, {transform_indices = @transform_10, window_bounds = array<i64: 32, 128>}]} {
    %c0 = arith.constant 0 : index
    %c0_0 = arith.constant 0 : index
    %0 = vector.load %arg1[%c0, %c0_0] : memref<32x128xf32, #tpu.memory_space<vmem>>, vector<32x128xf32>
    %1 = arith.mulf %0, %0 : vector<32x128xf32>
    %cst = arith.constant dense<0.000000e+00> : vector<32xf32>
    %2 = vector.multi_reduction <add>, %1, %cst [1] : vector<32x128xf32> to vector<32xf32>
    %3 = vector.shape_cast %2 : vector<32xf32> to vector<32x1xf32>
    %cst_1 = arith.constant 1.280000e+02 : f32
    %4 = vector.broadcast %cst_1 : f32 to vector<32x1xf32>
    %5 = arith.divf %3, %4 : vector<32x1xf32>
    %cst_2 = arith.constant 9.99999997E-7 : f32
    %6 = vector.broadcast %cst_2 : f32 to vector<32x1xf32>
    %7 = arith.addf %5, %6 : vector<32x1xf32>
    %8 = math.rsqrt %7 : vector<32x1xf32>
    %9 = vector.broadcast %8 : vector<32x1xf32> to vector<32x128xf32>
    %10 = arith.mulf %0, %9 : vector<32x128xf32>
    %c0_3 = arith.constant 0 : index
    %c0_4 = arith.constant 0 : index
    %11 = vector.load %arg4[%c0_3, %c0_4] : memref<1x128xf32, #tpu.memory_space<vmem>>, vector<1x128xf32>
    %12 = vector.broadcast %11 : vector<1x128xf32> to vector<32x128xf32>
    %13 = arith.mulf %10, %12 : vector<32x128xf32>
    %14 = arith.truncf %13 : vector<32x128xf32> to vector<32x128xbf16>
    %c0_5 = arith.constant 0 : index
    %c0_6 = arith.constant 0 : index
    %15 = vector.load %arg5[%c0_5, %c0_6] : memref<128x448xbf16, #tpu.memory_space<vmem>>, vector<128x448xbf16>
    %cst_7 = arith.constant dense<0.000000e+00> : vector<32x448xf32>
    %16 = tpu.matmul %14, %15, %cst_7 {dimension_numbers = #tpu.dot_dimension_numbers<[1], [0], [0], [1], [0, 0, 1, 1], [], []>} : vector<32x128xbf16>, vector<128x448xbf16>, vector<32x448xf32> -> vector<32x448xf32>
    %c0_8 = arith.constant 0 : index
    %c0_9 = arith.constant 0 : index
    %17 = vector.load %arg6[%c0_8, %c0_9] : memref<1x448xf32, #tpu.memory_space<vmem>>, vector<1x448xf32>
    %18 = vector.broadcast %17 : vector<1x448xf32> to vector<32x448xf32>
    %19 = arith.addf %16, %18 : vector<32x448xf32>
    %20 = vector.extract_strided_slice %19 {offsets = [0, 0], sizes = [32, 192], strides = [1, 1]} : vector<32x448xf32> to vector<32x192xf32>
    %21 = vector.extract_strided_slice %19 {offsets = [0, 192], sizes = [32, 64], strides = [1, 1]} : vector<32x448xf32> to vector<32x64xf32>
    %22 = vector.extract_strided_slice %19 {offsets = [0, 256], sizes = [32, 192], strides = [1, 1]} : vector<32x448xf32> to vector<32x192xf32>
    %c0_10 = arith.constant 0 : index
    %c0_11 = arith.constant 0 : index
    %23 = vector.load %arg2[%c0_10, %c0_11] : memref<32x192xf32, #tpu.memory_space<vmem>>, vector<32x192xf32>
    %24 = arith.mulf %20, %23 : vector<32x192xf32>
    %c0_12 = arith.constant 0 : index
    %c0_13 = arith.constant 0 : index
    %25 = vector.load %arg3[%c0_12, %c0_13] : memref<32x192xf32, #tpu.memory_space<vmem>>, vector<32x192xf32>
    %26 = arith.mulf %22, %25 : vector<32x192xf32>
    %27 = arith.addf %24, %26 : vector<32x192xf32>
    %28 = vector.extract_strided_slice %27 {offsets = [0, 0], sizes = [32, 128], strides = [1, 1]} : vector<32x192xf32> to vector<32x128xf32>
    %29 = vector.extract_strided_slice %27 {offsets = [0, 128], sizes = [32, 64], strides = [1, 1]} : vector<32x192xf32> to vector<32x64xf32>
    %30 = tpu.iota {dimensions = array<i32: 0>} : vector<16x16xi32>
    %31 = tpu.iota {dimensions = array<i32: 1>} : vector<16x16xi32>
    %32 = arith.cmpi sge, %30, %31 : vector<16x16xi32>
    %33 = vector.extract_strided_slice %28 {offsets = [0, 0], sizes = [16, 128], strides = [1, 1]} : vector<32x128xf32> to vector<16x128xf32>
    %34 = vector.extract_strided_slice %29 {offsets = [0, 0], sizes = [16, 64], strides = [1, 1]} : vector<32x64xf32> to vector<16x64xf32>
    %35 = tpu.transpose %34, [1, 0] : vector<16x64xf32> -> vector<64x16xf32>
    %36 = vector.extract_strided_slice %21 {offsets = [0, 0], sizes = [16, 64], strides = [1, 1]} : vector<32x64xf32> to vector<16x64xf32>
    %37 = vector.extract_strided_slice %33 {offsets = [0, 0], sizes = [16, 32], strides = [1, 1]} : vector<16x128xf32> to vector<16x32xf32>
    %38 = vector.extract_strided_slice %35 {offsets = [0, 0], sizes = [32, 16], strides = [1, 1]} : vector<64x16xf32> to vector<32x16xf32>
    %cst_14 = arith.constant dense<0.000000e+00> : vector<16x16xf32>
    %39 = tpu.matmul %37, %38, %cst_14 {dimension_numbers = #tpu.dot_dimension_numbers<[1], [0], [0], [1], [0, 0, 1, 1], [], []>} : vector<16x32xf32>, vector<32x16xf32>, vector<16x16xf32> -> vector<16x16xf32>
    %cst_15 = arith.constant 0.176776692 : f32
    %40 = vector.broadcast %cst_15 : f32 to vector<16x16xf32>
    %41 = arith.mulf %39, %40 : vector<16x16xf32>
    %cst_16 = arith.constant -1.000000e+30 : f32
    %42 = vector.broadcast %cst_16 : f32 to vector<16x16xf32>
    %43 = arith.select %32, %41, %42 : vector<16x16xi1>, vector<16x16xf32>
    %cst_17 = arith.constant dense<0xFF800000> : vector<16xf32>
    %44 = vector.multi_reduction <maximumf>, %43, %cst_17 [1] : vector<16x16xf32> to vector<16xf32>
    %45 = vector.shape_cast %44 : vector<16xf32> to vector<16x1xf32>
    %46 = vector.broadcast %45 : vector<16x1xf32> to vector<16x16xf32>
    %47 = arith.subf %43, %46 : vector<16x16xf32>
    %48 = math.exp %47 : vector<16x16xf32>
    %cst_18 = arith.constant dense<0.000000e+00> : vector<16xf32>
    %49 = vector.multi_reduction <add>, %48, %cst_18 [1] : vector<16x16xf32> to vector<16xf32>
    %50 = vector.shape_cast %49 : vector<16xf32> to vector<16x1xf32>
    %51 = tpu.reciprocal %50 {approx = true} : vector<16x1xf32> -> vector<16x1xf32>
    %52 = vector.broadcast %51 : vector<16x1xf32> to vector<16x16xf32>
    %53 = arith.mulf %48, %52 : vector<16x16xf32>
    %54 = vector.extract_strided_slice %36 {offsets = [0, 0], sizes = [16, 32], strides = [1, 1]} : vector<16x64xf32> to vector<16x32xf32>
    %cst_19 = arith.constant dense<0.000000e+00> : vector<16x32xf32>
    %55 = tpu.matmul %53, %54, %cst_19 {dimension_numbers = #tpu.dot_dimension_numbers<[1], [0], [0], [1], [0, 0, 1, 1], [], []>} : vector<16x16xf32>, vector<16x32xf32>, vector<16x32xf32> -> vector<16x32xf32>
    %56 = vector.extract_strided_slice %33 {offsets = [0, 32], sizes = [16, 32], strides = [1, 1]} : vector<16x128xf32> to vector<16x32xf32>
    %57 = vector.extract_strided_slice %35 {offsets = [0, 0], sizes = [32, 16], strides = [1, 1]} : vector<64x16xf32> to vector<32x16xf32>
    %cst_20 = arith.constant dense<0.000000e+00> : vector<16x16xf32>
    %58 = tpu.matmul %56, %57, %cst_20 {dimension_numbers = #tpu.dot_dimension_numbers<[1], [0], [0], [1], [0, 0, 1, 1], [], []>} : vector<16x32xf32>, vector<32x16xf32>, vector<16x16xf32> -> vector<16x16xf32>
    %cst_21 = arith.constant 0.176776692 : f32
    %59 = vector.broadcast %cst_21 : f32 to vector<16x16xf32>
    %60 = arith.mulf %58, %59 : vector<16x16xf32>
    %cst_22 = arith.constant -1.000000e+30 : f32
    %61 = vector.broadcast %cst_22 : f32 to vector<16x16xf32>
    %62 = arith.select %32, %60, %61 : vector<16x16xi1>, vector<16x16xf32>
    %cst_23 = arith.constant dense<0xFF800000> : vector<16xf32>
    %63 = vector.multi_reduction <maximumf>, %62, %cst_23 [1] : vector<16x16xf32> to vector<16xf32>
    %64 = vector.shape_cast %63 : vector<16xf32> to vector<16x1xf32>
    %65 = vector.broadcast %64 : vector<16x1xf32> to vector<16x16xf32>
    %66 = arith.subf %62, %65 : vector<16x16xf32>
    %67 = math.exp %66 : vector<16x16xf32>
    %cst_24 = arith.constant dense<0.000000e+00> : vector<16xf32>
    %68 = vector.multi_reduction <add>, %67, %cst_24 [1] : vector<16x16xf32> to vector<16xf32>
    %69 = vector.shape_cast %68 : vector<16xf32> to vector<16x1xf32>
    %70 = tpu.reciprocal %69 {approx = true} : vector<16x1xf32> -> vector<16x1xf32>
    %71 = vector.broadcast %70 : vector<16x1xf32> to vector<16x16xf32>
    %72 = arith.mulf %67, %71 : vector<16x16xf32>
    %73 = vector.extract_strided_slice %36 {offsets = [0, 0], sizes = [16, 32], strides = [1, 1]} : vector<16x64xf32> to vector<16x32xf32>
    %cst_25 = arith.constant dense<0.000000e+00> : vector<16x32xf32>
    %74 = tpu.matmul %72, %73, %cst_25 {dimension_numbers = #tpu.dot_dimension_numbers<[1], [0], [0], [1], [0, 0, 1, 1], [], []>} : vector<16x16xf32>, vector<16x32xf32>, vector<16x32xf32> -> vector<16x32xf32>
    %75 = vector.extract_strided_slice %33 {offsets = [0, 64], sizes = [16, 32], strides = [1, 1]} : vector<16x128xf32> to vector<16x32xf32>
    %76 = vector.extract_strided_slice %35 {offsets = [32, 0], sizes = [32, 16], strides = [1, 1]} : vector<64x16xf32> to vector<32x16xf32>
    %cst_26 = arith.constant dense<0.000000e+00> : vector<16x16xf32>
    %77 = tpu.matmul %75, %76, %cst_26 {dimension_numbers = #tpu.dot_dimension_numbers<[1], [0], [0], [1], [0, 0, 1, 1], [], []>} : vector<16x32xf32>, vector<32x16xf32>, vector<16x16xf32> -> vector<16x16xf32>
    %cst_27 = arith.constant 0.176776692 : f32
    %78 = vector.broadcast %cst_27 : f32 to vector<16x16xf32>
    %79 = arith.mulf %77, %78 : vector<16x16xf32>
    %cst_28 = arith.constant -1.000000e+30 : f32
    %80 = vector.broadcast %cst_28 : f32 to vector<16x16xf32>
    %81 = arith.select %32, %79, %80 : vector<16x16xi1>, vector<16x16xf32>
    %cst_29 = arith.constant dense<0xFF800000> : vector<16xf32>
    %82 = vector.multi_reduction <maximumf>, %81, %cst_29 [1] : vector<16x16xf32> to vector<16xf32>
    %83 = vector.shape_cast %82 : vector<16xf32> to vector<16x1xf32>
    %84 = vector.broadcast %83 : vector<16x1xf32> to vector<16x16xf32>
    %85 = arith.subf %81, %84 : vector<16x16xf32>
    %86 = math.exp %85 : vector<16x16xf32>
    %cst_30 = arith.constant dense<0.000000e+00> : vector<16xf32>
    %87 = vector.multi_reduction <add>, %86, %cst_30 [1] : vector<16x16xf32> to vector<16xf32>
    %88 = vector.shape_cast %87 : vector<16xf32> to vector<16x1xf32>
    %89 = tpu.reciprocal %88 {approx = true} : vector<16x1xf32> -> vector<16x1xf32>
    %90 = vector.broadcast %89 : vector<16x1xf32> to vector<16x16xf32>
    %91 = arith.mulf %86, %90 : vector<16x16xf32>
    %92 = vector.extract_strided_slice %36 {offsets = [0, 32], sizes = [16, 32], strides = [1, 1]} : vector<16x64xf32> to vector<16x32xf32>
    %cst_31 = arith.constant dense<0.000000e+00> : vector<16x32xf32>
    %93 = tpu.matmul %91, %92, %cst_31 {dimension_numbers = #tpu.dot_dimension_numbers<[1], [0], [0], [1], [0, 0, 1, 1], [], []>} : vector<16x16xf32>, vector<16x32xf32>, vector<16x32xf32> -> vector<16x32xf32>
    %94 = vector.extract_strided_slice %33 {offsets = [0, 96], sizes = [16, 32], strides = [1, 1]} : vector<16x128xf32> to vector<16x32xf32>
    %95 = vector.extract_strided_slice %35 {offsets = [32, 0], sizes = [32, 16], strides = [1, 1]} : vector<64x16xf32> to vector<32x16xf32>
    %cst_32 = arith.constant dense<0.000000e+00> : vector<16x16xf32>
    %96 = tpu.matmul %94, %95, %cst_32 {dimension_numbers = #tpu.dot_dimension_numbers<[1], [0], [0], [1], [0, 0, 1, 1], [], []>} : vector<16x32xf32>, vector<32x16xf32>, vector<16x16xf32> -> vector<16x16xf32>
    %cst_33 = arith.constant 0.176776692 : f32
    %97 = vector.broadcast %cst_33 : f32 to vector<16x16xf32>
    %98 = arith.mulf %96, %97 : vector<16x16xf32>
    %cst_34 = arith.constant -1.000000e+30 : f32
    %99 = vector.broadcast %cst_34 : f32 to vector<16x16xf32>
    %100 = arith.select %32, %98, %99 : vector<16x16xi1>, vector<16x16xf32>
    %cst_35 = arith.constant dense<0xFF800000> : vector<16xf32>
    %101 = vector.multi_reduction <maximumf>, %100, %cst_35 [1] : vector<16x16xf32> to vector<16xf32>
    %102 = vector.shape_cast %101 : vector<16xf32> to vector<16x1xf32>
    %103 = vector.broadcast %102 : vector<16x1xf32> to vector<16x16xf32>
    %104 = arith.subf %100, %103 : vector<16x16xf32>
    %105 = math.exp %104 : vector<16x16xf32>
    %cst_36 = arith.constant dense<0.000000e+00> : vector<16xf32>
    %106 = vector.multi_reduction <add>, %105, %cst_36 [1] : vector<16x16xf32> to vector<16xf32>
    %107 = vector.shape_cast %106 : vector<16xf32> to vector<16x1xf32>
    %108 = tpu.reciprocal %107 {approx = true} : vector<16x1xf32> -> vector<16x1xf32>
    %109 = vector.broadcast %108 : vector<16x1xf32> to vector<16x16xf32>
    %110 = arith.mulf %105, %109 : vector<16x16xf32>
    %111 = vector.extract_strided_slice %36 {offsets = [0, 32], sizes = [16, 32], strides = [1, 1]} : vector<16x64xf32> to vector<16x32xf32>
    %cst_37 = arith.constant dense<0.000000e+00> : vector<16x32xf32>
    %112 = tpu.matmul %110, %111, %cst_37 {dimension_numbers = #tpu.dot_dimension_numbers<[1], [0], [0], [1], [0, 0, 1, 1], [], []>} : vector<16x16xf32>, vector<16x32xf32>, vector<16x32xf32> -> vector<16x32xf32>
    %113 = tpu.concatenate %55, %74, %93, %112 in 1 : vector<16x32xf32>, vector<16x32xf32>, vector<16x32xf32>, vector<16x32xf32> -> vector<16x128xf32>
    %114 = vector.extract_strided_slice %28 {offsets = [16, 0], sizes = [16, 128], strides = [1, 1]} : vector<32x128xf32> to vector<16x128xf32>
    %115 = vector.extract_strided_slice %29 {offsets = [16, 0], sizes = [16, 64], strides = [1, 1]} : vector<32x64xf32> to vector<16x64xf32>
    %116 = tpu.transpose %115, [1, 0] : vector<16x64xf32> -> vector<64x16xf32>
    %117 = vector.extract_strided_slice %21 {offsets = [16, 0], sizes = [16, 64], strides = [1, 1]} : vector<32x64xf32> to vector<16x64xf32>
    %118 = vector.extract_strided_slice %114 {offsets = [0, 0], sizes = [16, 32], strides = [1, 1]} : vector<16x128xf32> to vector<16x32xf32>
    %119 = vector.extract_strided_slice %116 {offsets = [0, 0], sizes = [32, 16], strides = [1, 1]} : vector<64x16xf32> to vector<32x16xf32>
    %cst_38 = arith.constant dense<0.000000e+00> : vector<16x16xf32>
    %120 = tpu.matmul %118, %119, %cst_38 {dimension_numbers = #tpu.dot_dimension_numbers<[1], [0], [0], [1], [0, 0, 1, 1], [], []>} : vector<16x32xf32>, vector<32x16xf32>, vector<16x16xf32> -> vector<16x16xf32>
    %cst_39 = arith.constant 0.176776692 : f32
    %121 = vector.broadcast %cst_39 : f32 to vector<16x16xf32>
    %122 = arith.mulf %120, %121 : vector<16x16xf32>
    %cst_40 = arith.constant -1.000000e+30 : f32
    %123 = vector.broadcast %cst_40 : f32 to vector<16x16xf32>
    %124 = arith.select %32, %122, %123 : vector<16x16xi1>, vector<16x16xf32>
    %cst_41 = arith.constant dense<0xFF800000> : vector<16xf32>
    %125 = vector.multi_reduction <maximumf>, %124, %cst_41 [1] : vector<16x16xf32> to vector<16xf32>
    %126 = vector.shape_cast %125 : vector<16xf32> to vector<16x1xf32>
    %127 = vector.broadcast %126 : vector<16x1xf32> to vector<16x16xf32>
    %128 = arith.subf %124, %127 : vector<16x16xf32>
    %129 = math.exp %128 : vector<16x16xf32>
    %cst_42 = arith.constant dense<0.000000e+00> : vector<16xf32>
    %130 = vector.multi_reduction <add>, %129, %cst_42 [1] : vector<16x16xf32> to vector<16xf32>
    %131 = vector.shape_cast %130 : vector<16xf32> to vector<16x1xf32>
    %132 = tpu.reciprocal %131 {approx = true} : vector<16x1xf32> -> vector<16x1xf32>
    %133 = vector.broadcast %132 : vector<16x1xf32> to vector<16x16xf32>
    %134 = arith.mulf %129, %133 : vector<16x16xf32>
    %135 = vector.extract_strided_slice %117 {offsets = [0, 0], sizes = [16, 32], strides = [1, 1]} : vector<16x64xf32> to vector<16x32xf32>
    %cst_43 = arith.constant dense<0.000000e+00> : vector<16x32xf32>
    %136 = tpu.matmul %134, %135, %cst_43 {dimension_numbers = #tpu.dot_dimension_numbers<[1], [0], [0], [1], [0, 0, 1, 1], [], []>} : vector<16x16xf32>, vector<16x32xf32>, vector<16x32xf32> -> vector<16x32xf32>
    %137 = vector.extract_strided_slice %114 {offsets = [0, 32], sizes = [16, 32], strides = [1, 1]} : vector<16x128xf32> to vector<16x32xf32>
    %138 = vector.extract_strided_slice %116 {offsets = [0, 0], sizes = [32, 16], strides = [1, 1]} : vector<64x16xf32> to vector<32x16xf32>
    %cst_44 = arith.constant dense<0.000000e+00> : vector<16x16xf32>
    %139 = tpu.matmul %137, %138, %cst_44 {dimension_numbers = #tpu.dot_dimension_numbers<[1], [0], [0], [1], [0, 0, 1, 1], [], []>} : vector<16x32xf32>, vector<32x16xf32>, vector<16x16xf32> -> vector<16x16xf32>
    %cst_45 = arith.constant 0.176776692 : f32
    %140 = vector.broadcast %cst_45 : f32 to vector<16x16xf32>
    %141 = arith.mulf %139, %140 : vector<16x16xf32>
    %cst_46 = arith.constant -1.000000e+30 : f32
    %142 = vector.broadcast %cst_46 : f32 to vector<16x16xf32>
    %143 = arith.select %32, %141, %142 : vector<16x16xi1>, vector<16x16xf32>
    %cst_47 = arith.constant dense<0xFF800000> : vector<16xf32>
    %144 = vector.multi_reduction <maximumf>, %143, %cst_47 [1] : vector<16x16xf32> to vector<16xf32>
    %145 = vector.shape_cast %144 : vector<16xf32> to vector<16x1xf32>
    %146 = vector.broadcast %145 : vector<16x1xf32> to vector<16x16xf32>
    %147 = arith.subf %143, %146 : vector<16x16xf32>
    %148 = math.exp %147 : vector<16x16xf32>
    %cst_48 = arith.constant dense<0.000000e+00> : vector<16xf32>
    %149 = vector.multi_reduction <add>, %148, %cst_48 [1] : vector<16x16xf32> to vector<16xf32>
    %150 = vector.shape_cast %149 : vector<16xf32> to vector<16x1xf32>
    %151 = tpu.reciprocal %150 {approx = true} : vector<16x1xf32> -> vector<16x1xf32>
    %152 = vector.broadcast %151 : vector<16x1xf32> to vector<16x16xf32>
    %153 = arith.mulf %148, %152 : vector<16x16xf32>
    %154 = vector.extract_strided_slice %117 {offsets = [0, 0], sizes = [16, 32], strides = [1, 1]} : vector<16x64xf32> to vector<16x32xf32>
    %cst_49 = arith.constant dense<0.000000e+00> : vector<16x32xf32>
    %155 = tpu.matmul %153, %154, %cst_49 {dimension_numbers = #tpu.dot_dimension_numbers<[1], [0], [0], [1], [0, 0, 1, 1], [], []>} : vector<16x16xf32>, vector<16x32xf32>, vector<16x32xf32> -> vector<16x32xf32>
    %156 = vector.extract_strided_slice %114 {offsets = [0, 64], sizes = [16, 32], strides = [1, 1]} : vector<16x128xf32> to vector<16x32xf32>
    %157 = vector.extract_strided_slice %116 {offsets = [32, 0], sizes = [32, 16], strides = [1, 1]} : vector<64x16xf32> to vector<32x16xf32>
    %cst_50 = arith.constant dense<0.000000e+00> : vector<16x16xf32>
    %158 = tpu.matmul %156, %157, %cst_50 {dimension_numbers = #tpu.dot_dimension_numbers<[1], [0], [0], [1], [0, 0, 1, 1], [], []>} : vector<16x32xf32>, vector<32x16xf32>, vector<16x16xf32> -> vector<16x16xf32>
    %cst_51 = arith.constant 0.176776692 : f32
    %159 = vector.broadcast %cst_51 : f32 to vector<16x16xf32>
    %160 = arith.mulf %158, %159 : vector<16x16xf32>
    %cst_52 = arith.constant -1.000000e+30 : f32
    %161 = vector.broadcast %cst_52 : f32 to vector<16x16xf32>
    %162 = arith.select %32, %160, %161 : vector<16x16xi1>, vector<16x16xf32>
    %cst_53 = arith.constant dense<0xFF800000> : vector<16xf32>
    %163 = vector.multi_reduction <maximumf>, %162, %cst_53 [1] : vector<16x16xf32> to vector<16xf32>
    %164 = vector.shape_cast %163 : vector<16xf32> to vector<16x1xf32>
    %165 = vector.broadcast %164 : vector<16x1xf32> to vector<16x16xf32>
    %166 = arith.subf %162, %165 : vector<16x16xf32>
    %167 = math.exp %166 : vector<16x16xf32>
    %cst_54 = arith.constant dense<0.000000e+00> : vector<16xf32>
    %168 = vector.multi_reduction <add>, %167, %cst_54 [1] : vector<16x16xf32> to vector<16xf32>
    %169 = vector.shape_cast %168 : vector<16xf32> to vector<16x1xf32>
    %170 = tpu.reciprocal %169 {approx = true} : vector<16x1xf32> -> vector<16x1xf32>
    %171 = vector.broadcast %170 : vector<16x1xf32> to vector<16x16xf32>
    %172 = arith.mulf %167, %171 : vector<16x16xf32>
    %173 = vector.extract_strided_slice %117 {offsets = [0, 32], sizes = [16, 32], strides = [1, 1]} : vector<16x64xf32> to vector<16x32xf32>
    %cst_55 = arith.constant dense<0.000000e+00> : vector<16x32xf32>
    %174 = tpu.matmul %172, %173, %cst_55 {dimension_numbers = #tpu.dot_dimension_numbers<[1], [0], [0], [1], [0, 0, 1, 1], [], []>} : vector<16x16xf32>, vector<16x32xf32>, vector<16x32xf32> -> vector<16x32xf32>
    %175 = vector.extract_strided_slice %114 {offsets = [0, 96], sizes = [16, 32], strides = [1, 1]} : vector<16x128xf32> to vector<16x32xf32>
    %176 = vector.extract_strided_slice %116 {offsets = [32, 0], sizes = [32, 16], strides = [1, 1]} : vector<64x16xf32> to vector<32x16xf32>
    %cst_56 = arith.constant dense<0.000000e+00> : vector<16x16xf32>
    %177 = tpu.matmul %175, %176, %cst_56 {dimension_numbers = #tpu.dot_dimension_numbers<[1], [0], [0], [1], [0, 0, 1, 1], [], []>} : vector<16x32xf32>, vector<32x16xf32>, vector<16x16xf32> -> vector<16x16xf32>
    %cst_57 = arith.constant 0.176776692 : f32
    %178 = vector.broadcast %cst_57 : f32 to vector<16x16xf32>
    %179 = arith.mulf %177, %178 : vector<16x16xf32>
    %cst_58 = arith.constant -1.000000e+30 : f32
    %180 = vector.broadcast %cst_58 : f32 to vector<16x16xf32>
    %181 = arith.select %32, %179, %180 : vector<16x16xi1>, vector<16x16xf32>
    %cst_59 = arith.constant dense<0xFF800000> : vector<16xf32>
    %182 = vector.multi_reduction <maximumf>, %181, %cst_59 [1] : vector<16x16xf32> to vector<16xf32>
    %183 = vector.shape_cast %182 : vector<16xf32> to vector<16x1xf32>
    %184 = vector.broadcast %183 : vector<16x1xf32> to vector<16x16xf32>
    %185 = arith.subf %181, %184 : vector<16x16xf32>
    %186 = math.exp %185 : vector<16x16xf32>
    %cst_60 = arith.constant dense<0.000000e+00> : vector<16xf32>
    %187 = vector.multi_reduction <add>, %186, %cst_60 [1] : vector<16x16xf32> to vector<16xf32>
    %188 = vector.shape_cast %187 : vector<16xf32> to vector<16x1xf32>
    %189 = tpu.reciprocal %188 {approx = true} : vector<16x1xf32> -> vector<16x1xf32>
    %190 = vector.broadcast %189 : vector<16x1xf32> to vector<16x16xf32>
    %191 = arith.mulf %186, %190 : vector<16x16xf32>
    %192 = vector.extract_strided_slice %117 {offsets = [0, 32], sizes = [16, 32], strides = [1, 1]} : vector<16x64xf32> to vector<16x32xf32>
    %cst_61 = arith.constant dense<0.000000e+00> : vector<16x32xf32>
    %193 = tpu.matmul %191, %192, %cst_61 {dimension_numbers = #tpu.dot_dimension_numbers<[1], [0], [0], [1], [0, 0, 1, 1], [], []>} : vector<16x16xf32>, vector<16x32xf32>, vector<16x32xf32> -> vector<16x32xf32>
    %194 = tpu.concatenate %136, %155, %174, %193 in 1 : vector<16x32xf32>, vector<16x32xf32>, vector<16x32xf32>, vector<16x32xf32> -> vector<16x128xf32>
    %195 = tpu.concatenate %113, %194 in 0 : vector<16x128xf32>, vector<16x128xf32> -> vector<32x128xf32>
    %196 = arith.truncf %195 : vector<32x128xf32> to vector<32x128xbf16>
    %c0_62 = arith.constant 0 : index
    %c0_63 = arith.constant 0 : index
    %197 = vector.load %arg7[%c0_62, %c0_63] : memref<128x128xbf16, #tpu.memory_space<vmem>>, vector<128x128xbf16>
    %cst_64 = arith.constant dense<0.000000e+00> : vector<32x128xf32>
    %198 = tpu.matmul %196, %197, %cst_64 {dimension_numbers = #tpu.dot_dimension_numbers<[1], [0], [0], [1], [0, 0, 1, 1], [], []>} : vector<32x128xbf16>, vector<128x128xbf16>, vector<32x128xf32> -> vector<32x128xf32>
    %199 = arith.addf %0, %198 : vector<32x128xf32>
    %200 = arith.mulf %199, %199 : vector<32x128xf32>
    %cst_65 = arith.constant dense<0.000000e+00> : vector<32xf32>
    %201 = vector.multi_reduction <add>, %200, %cst_65 [1] : vector<32x128xf32> to vector<32xf32>
    %202 = vector.shape_cast %201 : vector<32xf32> to vector<32x1xf32>
    %cst_66 = arith.constant 1.280000e+02 : f32
    %203 = vector.broadcast %cst_66 : f32 to vector<32x1xf32>
    %204 = arith.divf %202, %203 : vector<32x1xf32>
    %cst_67 = arith.constant 9.99999997E-7 : f32
    %205 = vector.broadcast %cst_67 : f32 to vector<32x1xf32>
    %206 = arith.addf %204, %205 : vector<32x1xf32>
    %207 = math.rsqrt %206 : vector<32x1xf32>
    %208 = vector.broadcast %207 : vector<32x1xf32> to vector<32x128xf32>
    %209 = arith.mulf %199, %208 : vector<32x128xf32>
    %c0_68 = arith.constant 0 : index
    %c0_69 = arith.constant 0 : index
    %210 = vector.load %arg8[%c0_68, %c0_69] : memref<1x128xf32, #tpu.memory_space<vmem>>, vector<1x128xf32>
    %211 = vector.broadcast %210 : vector<1x128xf32> to vector<32x128xf32>
    %212 = arith.mulf %209, %211 : vector<32x128xf32>
    %213 = arith.truncf %212 : vector<32x128xf32> to vector<32x128xbf16>
    %c0_70 = arith.constant 0 : index
    %c0_71 = arith.constant 0 : index
    %214 = vector.load %arg9[%c0_70, %c0_71] : memref<128x512xbf16, #tpu.memory_space<vmem>>, vector<128x512xbf16>
    %cst_72 = arith.constant dense<0.000000e+00> : vector<32x512xf32>
    %215 = tpu.matmul %213, %214, %cst_72 {dimension_numbers = #tpu.dot_dimension_numbers<[1], [0], [0], [1], [0, 0, 1, 1], [], []>} : vector<32x128xbf16>, vector<128x512xbf16>, vector<32x512xf32> -> vector<32x512xf32>
    %216 = vector.extract_strided_slice %215 {offsets = [0, 0], sizes = [32, 256], strides = [1, 1]} : vector<32x512xf32> to vector<32x256xf32>
    %217 = vector.extract_strided_slice %215 {offsets = [0, 256], sizes = [32, 256], strides = [1, 1]} : vector<32x512xf32> to vector<32x256xf32>
    %218 = arith.negf %216 : vector<32x256xf32>
    %219 = math.exp %218 : vector<32x256xf32>
    %cst_73 = arith.constant 1.000000e+00 : f32
    %220 = vector.broadcast %cst_73 : f32 to vector<32x256xf32>
    %221 = arith.addf %220, %219 : vector<32x256xf32>
    %222 = arith.divf %220, %221 : vector<32x256xf32>
    %223 = arith.mulf %216, %222 : vector<32x256xf32>
    %224 = arith.mulf %223, %217 : vector<32x256xf32>
    %225 = arith.truncf %224 : vector<32x256xf32> to vector<32x256xbf16>
    %c0_74 = arith.constant 0 : index
    %c0_75 = arith.constant 0 : index
    %226 = vector.load %arg10[%c0_74, %c0_75] : memref<256x128xbf16, #tpu.memory_space<vmem>>, vector<256x128xbf16>
    %cst_76 = arith.constant dense<0.000000e+00> : vector<32x128xf32>
    %227 = tpu.matmul %225, %226, %cst_76 {dimension_numbers = #tpu.dot_dimension_numbers<[1], [0], [0], [1], [0, 0, 1, 1], [], []>} : vector<32x256xbf16>, vector<256x128xbf16>, vector<32x128xf32> -> vector<32x128xf32>
    %228 = arith.addf %199, %227 : vector<32x128xf32>
    %c0_77 = arith.constant 0 : index
    %c0_78 = arith.constant 0 : index
    %229 = vector.load %arg11[%c0_77, %c0_78] : memref<32x128xf32, #tpu.memory_space<vmem>>, vector<32x128xf32>
    tpu.vector_store %arg11[%c0_77, %c0_78], %228 {strides = array<i32>} : memref<32x128xf32, #tpu.memory_space<vmem>>, vector<32x128xf32>,
    return
  }
  func.func @transform_0(%arg0: i32) -> (i32, i32) {
    %c0_i32 = arith.constant 0 : i32
    %c0_i32_0 = arith.constant 0 : i32
    return %arg0, %c0_i32 : i32, i32
  }
  func.func @transform_1(%arg0: i32) -> (i32, i32) {
    %c0_i32 = arith.constant 0 : i32
    %c0_i32_0 = arith.constant 0 : i32
    return %arg0, %c0_i32 : i32, i32
  }
  func.func @transform_2(%arg0: i32) -> (i32, i32) {
    %c0_i32 = arith.constant 0 : i32
    %c0_i32_0 = arith.constant 0 : i32
    return %arg0, %c0_i32 : i32, i32
  }
  func.func @transform_3(%arg0: i32) -> (i32, i32) {
    %c0_i32 = arith.constant 0 : i32
    %c0_i32_0 = arith.constant 0 : i32
    %c0_i32_1 = arith.constant 0 : i32
    return %c0_i32, %c0_i32_0 : i32, i32
  }
  func.func @transform_4(%arg0: i32) -> (i32, i32) {
    %c0_i32 = arith.constant 0 : i32
    %c0_i32_0 = arith.constant 0 : i32
    %c0_i32_1 = arith.constant 0 : i32
    return %c0_i32, %c0_i32_0 : i32, i32
  }
  func.func @transform_5(%arg0: i32) -> (i32, i32) {
    %c0_i32 = arith.constant 0 : i32
    %c0_i32_0 = arith.constant 0 : i32
    %c0_i32_1 = arith.constant 0 : i32
    return %c0_i32, %c0_i32_0 : i32, i32
  }
  func.func @transform_6(%arg0: i32) -> (i32, i32) {
    %c0_i32 = arith.constant 0 : i32
    %c0_i32_0 = arith.constant 0 : i32
    %c0_i32_1 = arith.constant 0 : i32
    return %c0_i32, %c0_i32_0 : i32, i32
  }
  func.func @transform_7(%arg0: i32) -> (i32, i32) {
    %c0_i32 = arith.constant 0 : i32
    %c0_i32_0 = arith.constant 0 : i32
    %c0_i32_1 = arith.constant 0 : i32
    return %c0_i32, %c0_i32_0 : i32, i32
  }
  func.func @transform_8(%arg0: i32) -> (i32, i32) {
    %c0_i32 = arith.constant 0 : i32
    %c0_i32_0 = arith.constant 0 : i32
    %c0_i32_1 = arith.constant 0 : i32
    return %c0_i32, %c0_i32_0 : i32, i32
  }
  func.func @transform_9(%arg0: i32) -> (i32, i32) {
    %c0_i32 = arith.constant 0 : i32
    %c0_i32_0 = arith.constant 0 : i32
    %c0_i32_1 = arith.constant 0 : i32
    return %c0_i32, %c0_i32_0 : i32, i32
  }
  func.func @transform_10(%arg0: i32) -> (i32, i32) {
    %c0_i32 = arith.constant 0 : i32
    %c0_i32_0 = arith.constant 0 : i32
    return %arg0, %c0_i32 : i32, i32
  }
}

</mosaic_0001>

<bundles_post_ra>
// kernel: tpu_custom_call.1
= control target key start
LH: loop header
LB: loop body
LE: loop exit
PB: predicated region body
PF: predicated region fallthrough
CT: control target
= control target key end

     0   :  { %15 = vsyncpa [#allocation3], 0  ;;  %s4473_s0 = inlined_call_operand.vmem [shape: f32[32,128], index: 0, kind: input, shape index: {}]   ;;  %s4474_s1 = inlined_call_operand.vmem [shape: f32[32,192], index: 1, kind: input, shape index: {}]   ;;  %s4475_s2 = inlined_call_operand.hbm [shape: f32[32,192], index: 2, kind: input, shape index: {}]   ;;  %s4476_s3 = inlined_call_operand.vmem [shape: f32[1,128], index: 3, kind: input, shape index: {}]   ;;  %s4477_s4 = inlined_call_operand.vmem [shape: bf16[128,448], index: 4, kind: input, shape index: {}]   ;;  %s4478_s5 = inlined_call_operand.vmem [shape: f32[1,448], index: 5, kind: input, shape index: {}]   ;;  %s4479_s6 = inlined_call_operand.hbm [shape: bf16[128,128], index: 6, kind: input, shape index: {}]   ;;  %s4480_s7 = inlined_call_operand.vmem [shape: f32[1,128], index: 7, kind: input, shape index: {}]   ;;  %s4481_s8 = inlined_call_operand.vmem [shape: bf16[128,512], index: 8, kind: input, shape index: {}]   ;;  %s4482_s9 = inlined_call_operand.vmem [shape: bf16[256,128], index: 9, kind: input, shape index: {}]   ;;  %s4483_s10 = inlined_call_operand.hbm [shape: f32[32,128], index: 10, kind: output, shape index: {}]  }
   0x1   :  { %16 = vsyncpa [#allocation6], 0 }
   0x2   :  { %17 = vsyncpa [#allocation4], 0  ;;  %s3758_s13 = smov [#allocation2]   ;;  %s3686_s17 = scalar_lea.hbm %s4475_s2, 1024 }
   0x3   :  { %s27_s14 = sshll.u32 %s3758_s13, 4  ;;  %p3687_p0 = scmp.ne.s32.totalorder %s4475_s2, %s3686_s17  ;;  %s28_s14 = int_to_ptr.vmem [resolvable:$true] %s27_s14 }
   0x4   :  { %p3690_p1 = scmp.lt.u32.totalorder %s3686_s17, %s4475_s2 }
   0x6   :  { %p3692_p2 = pnand %p3690_p1, %p3687_p0 }
   0x8   :  { %3695 = shalt.err (!%p3692_p2)
}
   0x9   :  { %s3696_s22 = scalar_lea.vmem %s28_s14, 1024  ;;  %p3701_p4 = scmp.lt.s32.totalorder %s28_s14, %s28_s14 }
   0xa   :  { %p3697_p3 = scmp.ne.s32.totalorder %s28_s14, %s3696_s22  ;;  %p3702_p5 = scmp.lt.s32.totalorder %s3696_s22, %s3696_s22 }
   0xc   :  { %p3703_p6 = por %p3702_p5, %p3701_p4 }
   0xe   :  { %p3704_p7 = pnand %p3703_p6, %p3697_p3 }
  0x10   :  { %3707 = shalt.err (!%p3704_p7)
}
  0x11   :  { %s3759_s23 = smov 256   ;;  %s3760_s24 = smov 16  }
  0x12   :  { %33 = dma.hbm_to_vmem [thread:$0]  %s4475_s2, 1024, %s28_s14, [#allocation3], %s3759_s23, %s3759_s23, %s3760_s24  }
  0x13   :  { %s3761_s27 = smov [#allocation5]   ;;  %s3708_s11 = scalar_lea.hbm %s4479_s6, 1024 }
  0x14   :  { %s45_s28 = sshll.u32 %s3761_s27, 4  ;;  %p3709_p8 = scmp.ne.s32.totalorder %s4479_s6, %s3708_s11  ;;  %s46_s28 = int_to_ptr.vmem [resolvable:$true] %s45_s28 }
  0x15   :  { %p3712_p9 = scmp.lt.u32.totalorder %s3708_s11, %s4479_s6 }
  0x17   :  { %p3714_p10 = pnand %p3712_p9, %p3709_p8 }
  0x19   :  { %3717 = shalt.err (!%p3714_p10)
}
  0x1a   :  { %s3718_s17 = scalar_lea.vmem %s46_s28, 1024  ;;  %p3723_p12 = scmp.lt.s32.totalorder %s46_s28, %s46_s28 }
  0x1b   :  { %p3719_p11 = scmp.ne.s32.totalorder %s46_s28, %s3718_s17  ;;  %p3724_p13 = scmp.lt.s32.totalorder %s3718_s17, %s3718_s17 }
  0x1d   :  { %p3725_p0 = por %p3724_p13, %p3723_p12 }
  0x1f   :  { %p3726_p1 = pnand %p3725_p0, %p3719_p11 }
  0x21   :  { %3729 = shalt.err (!%p3726_p1)
}
  0x22   :  { %s3762_s2 = smov 64   ;;  %s3763_s14 = smov 4  }
  0x23   :  { %51 = dma.hbm_to_vmem [thread:$0]  %s4479_s6, 1024, %s46_s28, [#allocation6], %s3762_s2, %s3762_s2, %s3763_s14  }
  0x24   :  { %3752 = dma.done.wait [#allocation3], 1024  }
  0x25   :  { %3753 = vsyncadd [#allocation3], 4294966272 }
  0x26   :  { %3754 = dma.done.wait [#allocation6], 1024  }
  0x27   :  { %3755 = vsyncadd [#allocation6], 4294966272  ;;  %v3854_v0 = vld [vmem:[%s4473_s0] sm:$0xff]  ;;  %v3859_v1 = vld [vmem:[%s4473_s0 + $0x8] sm:$0xff]  ;;  %v3764_v34 = vmov 0   ;;  %vm510_vm0 = vcmask 261120  }
  0x28   :  { %v69_v2 = vmul.f32 %v3854_v0, %v3854_v0  ;;  %v3450_v3 = vld [vmem:[%s4477_s4 + $0x4] ss:$16 sps:$4 sm:$0xff]   ;;  %v3452_v4 = vld [vmem:[%s4477_s4 + $0xc] ss:$16 sps:$4 sm:$0xff]   ;;  %v3454_v5 = vld [vmem:[%s4477_s4] ss:$16 sps:$4 sm:$0xff]   ;;  %v70_v6 = vmul.f32 %v3859_v1, %v3859_v1  ;;  %357 = vmatprep.mubr.bf16.mxu0 %v3764_v34  ;;  %410 = vmatprep.mubr.bf16.mxu1 %v3764_v34 }
  0x29   :  { %325 = vmatprep.subr.bf16.mxu0 %v3450_v3  ;;  %v3455_v7 = vld [vmem:[%s4477_s4 + $0x8] ss:$16 sps:$4 sm:$0xff]   ;;  %378 = vmatprep.subr.bf16.mxu1 %v3452_v4  ;;  %v3456_v8 = vld [vmem:[%s4477_s4 + $0x24] ss:$16 sps:$4 sm:$0xff]   ;;  %v3458_v9 = vld [vmem:[%s4477_s4 + $0x2c] ss:$16 sps:$4 sm:$0xff]   ;;  %v145_v4 = vlaneseq }
  0x2a   :  { %73 = vadd.xlane.f32.xlu0 %v69_v2  ;;  %326 = vmatpush1.bf16.msra.mxu0 %v3454_v5  ;;  %v3460_v10 = vld [vmem:[%s4477_s4 + $0x20] ss:$16 sps:$4 sm:$0xff]   ;;  %v3461_v11 = vld [vmem:[%s4477_s4 + $0x28] ss:$16 sps:$4 sm:$0xff]   ;;  %v3462_v12 = vld [vmem:[%s4477_s4 + $0x44] ss:$16 sps:$4 sm:$0xff]  }
  0x2b   :  { %379 = vmatpush1.bf16.msra.mxu1 %v3455_v7  ;;  %327 = vmatprep.subr.bf16.mxu0 %v3456_v8  ;;  %v3464_v13 = vld [vmem:[%s4477_s4 + $0x4c] ss:$16 sps:$4 sm:$0xff]   ;;  %v3466_v14 = vld [vmem:[%s4477_s4 + $0x40] ss:$16 sps:$4 sm:$0xff]   ;;  %v3467_v15 = vld [vmem:[%s4477_s4 + $0x48] ss:$16 sps:$4 sm:$0xff]  }
  0x2c   :  { %380 = vmatprep.subr.bf16.mxu1 %v3458_v9  ;;  %v3468_v16 = vld [vmem:[%s4477_s4 + $0x64] ss:$16 sps:$4 sm:$0xff]   ;;  %v3470_v17 = vld [vmem:[%s4477_s4 + $0x6c] ss:$16 sps:$4 sm:$0xff]   ;;  %v3472_v18 = vld [vmem:[%s4477_s4 + $0x60] ss:$16 sps:$4 sm:$0xff]  }
  0x2d   :  { %v3473_v19 = vld [vmem:[%s4477_s4 + $0x68] ss:$16 sps:$4 sm:$0xff]   ;;  %v3474_v20 = vld [vmem:[%s4477_s4 + $0x84] ss:$16 sps:$4 sm:$0xff]   ;;  %v3476_v21 = vld [vmem:[%s4477_s4 + $0x8c] ss:$16 sps:$4 sm:$0xff]  }
  0x2e   :  { %75 = vadd.xlane.f32.xlu0 %v70_v6  ;;  %328 = vmatpush1.bf16.msra.mxu0 %v3460_v10  ;;  %v3478_v22 = vld [vmem:[%s4477_s4 + $0x80] ss:$16 sps:$4 sm:$0xff]   ;;  %v3479_v23 = vld [vmem:[%s4477_s4 + $0x88] ss:$16 sps:$4 sm:$0xff]   ;;  %v3480_v24 = vld [vmem:[%s4477_s4 + $0xa4] ss:$16 sps:$4 sm:$0xff]  }
  0x2f   :  { %381 = vmatpush1.bf16.msra.mxu1 %v3461_v11  ;;  %329 = vmatprep.subr.bf16.mxu0 %v3462_v12  ;;  %v3482_v25 = vld [vmem:[%s4477_s4 + $0xac] ss:$16 sps:$4 sm:$0xff]   ;;  %v3484_v26 = vld [vmem:[%s4477_s4 + $0xa0] ss:$16 sps:$4 sm:$0xff]   ;;  %v3485_v27 = vld [vmem:[%s4477_s4 + $0xa8] ss:$16 sps:$4 sm:$0xff]  }
  0x30   :  { %382 = vmatprep.subr.bf16.mxu1 %v3464_v13  ;;  %v3486_v28 = vld [vmem:[%s4477_s4 + $0xc4] ss:$16 sps:$4 sm:$0xff]   ;;  %v3488_v29 = vld [vmem:[%s4477_s4 + $0xcc] ss:$16 sps:$4 sm:$0xff]   ;;  %v3490_v30 = vld [vmem:[%s4477_s4 + $0xc0] ss:$16 sps:$4 sm:$0xff]  }
  0x31   :  { %v3491_v31 = vld [vmem:[%s4477_s4 + $0xc8] ss:$16 sps:$4 sm:$0xff]   ;;  %v3492_v32 = vld [vmem:[%s4477_s4 + $0xe4] ss:$16 sps:$4 sm:$0xff]   ;;  %v3494_v33 = vld [vmem:[%s4477_s4 + $0xec] ss:$16 sps:$4 sm:$0xff]  }
  0x32   :  { %330 = vmatpush1.bf16.msra.mxu0 %v3466_v14  ;;  %v3496_v35 = vld [vmem:[%s4477_s4 + $0xe0] ss:$16 sps:$4 sm:$0xff]   ;;  %v3497_v36 = vld [vmem:[%s4477_s4 + $0xe8] ss:$16 sps:$4 sm:$0xff]   ;;  %v3977_v5 = vshrl.u32 %v145_v4, 7  ;;  %s3765_s14 = smov 96  }
  0x33   :  { %383 = vmatpush1.bf16.msra.mxu1 %v3467_v15  ;;  %331 = vmatprep.subr.bf16.mxu0 %v3468_v16  ;;  %v67_v37 = vld [vmem:[%s4473_s0 + $0x10] sm:$0xff]  ;;  %v68_v38 = vld [vmem:[%s4473_s0 + $0x18] sm:$0xff]  ;;  %v2879_v50 = vld [vmem:[%s4476_s3] ss:$0 sm:$0xff]  ;;  %vm596_vm2 = vcmask 130048   ;;  %s3766_s24 = smov 32  }
  0x34   :  { %384 = vmatprep.subr.bf16.mxu1 %v3470_v17  ;;  %v71_v39 = vmul.f32 %v67_v37, %v67_v37  ;;  %v72_v40 = vmul.f32 %v68_v38, %v68_v38  ;;  %v147_v6 = vsub.s32 0, %v3977_v5  ;;  %v155_v7 = vsub.s32 2, %v3977_v5  ;;  %v143_v8 = vld [vmem:[%s4478_s5] sm:$0xf] }
  0x35   :  { %v151_v9 = vsub.s32 1, %v3977_v5  ;;  %v159_v10 = vsub.s32 3, %v3977_v5  ;;  %v431_v16 = vld [vmem:[%s4474_s1] sm:$0xff]  ;;  %vm1313_vm4 = vcmask 785408   ;;  %vm1310_vm5 = vcmask 523264  }
  0x36   :  { %332 = vmatpush1.bf16.msra.mxu0 %v3472_v18  ;;  %77 = vadd.xlane.f32.xlu1 %v71_v39  ;;  %v148_v11 = vrot.slane %v143_v8, %v147_v6  ;;  %v156_v12 = vrot.slane %v143_v8, %v155_v7  ;;  %v447_v18 = vld [vmem:[#allocation2] sm:$0xff]  ;;  %v450_v39 = vld [vmem:[#allocation2 + $0x18] sm:$0xff] }
  0x37   :  { %385 = vmatpush1.bf16.msra.mxu1 %v3473_v19  ;;  %333 = vmatprep.subr.bf16.mxu0 %v3474_v20  ;;  %v3986_v13 = vrot.slane %v143_v8, %v151_v9  ;;  %v3988_v14 = vrot.slane %v143_v8, %v159_v10 }
  0x38   :  { %386 = vmatprep.subr.bf16.mxu1 %v3476_v21 }
  0x3a   :  { %334 = vmatpush1.bf16.msra.mxu0 %v3478_v22  ;;  %79 = vadd.xlane.f32.xlu1 %v72_v40 }
  0x3b   :  { %387 = vmatpush1.bf16.msra.mxu1 %v3479_v23  ;;  %335 = vmatprep.subr.bf16.mxu0 %v3480_v24  ;;  %v448_v23 = vld [vmem:[#allocation2 + $0x8] sm:$0xff] }
  0x3c   :  { %388 = vmatprep.subr.bf16.mxu1 %v3482_v25  ;;  %v432_v24 = vld [vmem:[%s4474_s1 + $0x8] sm:$0xff] }
  0x3e   :  { %336 = vmatpush1.bf16.msra.mxu0 %v3484_v26 }
  0x3f   :  { %389 = vmatpush1.bf16.msra.mxu1 %v3485_v27  ;;  %337 = vmatprep.subr.bf16.mxu0 %v3486_v28  ;;  %v433_v28 = vld [vmem:[%s4474_s1 + $0x10] sm:$0xff] }
  0x40   :  { %390 = vmatprep.subr.bf16.mxu1 %v3488_v29 }
  0x42   :  { %338 = vmatpush1.bf16.msra.mxu0 %v3490_v30  ;;  %v449_v30 = vld [vmem:[#allocation2 + $0x10] sm:$0xff] }
  0x43   :  { %391 = vmatpush1.bf16.msra.mxu1 %v3491_v31  ;;  %339 = vmatprep.subr.bf16.mxu0 %v3492_v32 }
  0x44   :  { %392 = vmatprep.subr.bf16.mxu1 %v3494_v33 }
  0x46   :  { %340 = vmatpush1.bf16.msra.mxu0 %v3496_v35 }
  0x47   :  { %393 = vmatpush1.bf16.msra.mxu1 %v3497_v36 }
  0xb7   :  { %v74_v41 = vpop.xlane.xlu0 %73 }
  0xb8   :  { %v82_v42 = vmul.f32 0.0078125, %v74_v41 }
  0xba   :  { %v86_v43 = vadd.f32 1e-06, %v82_v42 }
  0xbb   :  { %v76_v44 = vpop.xlane.xlu0 %75 }
  0xbc   :  { %3570 = vrsqrt.f32 %v86_v43  ;;  %v83_v45 = vmul.f32 0.0078125, %v76_v44 }
  0xbe   :  { %v87_v46 = vadd.f32 1e-06, %v83_v45 }
  0xc0   :  { %3572 = vrsqrt.f32 %v87_v46 }
  0xc3   :  { %v78_v55 = vpop.xlane.xlu1 %77 }
  0xc4   :  { %v84_v57 = vmul.f32 0.0078125, %v78_v55 }
  0xc6   :  { %v3571_v47 = vpop.eup %3570  ;;  %v88_v59 = vadd.f32 1e-06, %v84_v57 }
  0xc7   :  { %v94_v48 = vmul.f32 %v3571_v47, %v3854_v0  ;;  %v80_v56 = vpop.xlane.xlu1 %79 }
  0xc8   :  { %v85_v58 = vmul.f32 0.0078125, %v80_v56  ;;  %3574 = vrsqrt.f32 %v88_v59  ;;  %v451_v56 = vld [vmem:[#allocation2 + $0x20] sm:$0xff] }
  0xc9   :  { %v105_v52 = vmul.f32 %v2879_v50, %v94_v48 }
  0xca   :  { %v3573_v49 = vpop.eup %3572  ;;  %v89_v60 = vadd.f32 1e-06, %v85_v58 }
  0xcb   :  { %v95_v51 = vmul.f32 %v3573_v49, %v3859_v1 }
  0xcc   :  { %3576 = vrsqrt.f32 %v89_v60 }
  0xcd   :  { %v106_v53 = vmul.f32 %v2879_v50, %v95_v51 }
  0xcf   :  { %v109_v54 = vpack.c.bf16 %v106_v53, %v105_v52 }
  0xd1   :  { %358 = vmatmul.mubr.bf16.vlgmr.msra.gmra.mrb[0].mxu0 %v109_v54  ;;  %411 = vmatmul.mubr.bf16.vlgmr.msra.gmra.mrb[0].mxu1 %v109_v54  ;;  %v435_v54 = vld [vmem:[%s4474_s1 + $0x20] sm:$0xff] }
  0xd2   :  { %367 = vmatprep.mubr.bf16.mxu0 %v3764_v34  ;;  %420 = vmatprep.mubr.bf16.mxu1 %v3764_v34  ;;  %v3575_v61 = vpop.eup %3574 }
  0xd3   :  { %v96_v63 = vmul.f32 %v3575_v61, %v67_v37  ;;  %v434_v37 = vld [vmem:[%s4474_s1 + $0x18] sm:$0xff] }
  0xd5   :  { %v107_v1 = vmul.f32 %v2879_v50, %v96_v63 }
  0xd6   :  { %v3577_v62 = vpop.eup %3576 }
  0xd7   :  { %v97_v0 = vmul.f32 %v3577_v62, %v68_v38  ;;  %v437_v62 = vld [vmem:[%s4474_s1 + $0x30] sm:$0xff] }
  0xd9   :  { %v108_v2 = vmul.f32 %v2879_v50, %v97_v0  ;;  %v453_v0 = vld [vmem:[#allocation2 + $0x30] sm:$0xff] }
  0xdb   :  { %v110_v3 = vpack.c.bf16 %v108_v2, %v107_v1 }
  0xdd   :  { %368 = vmatmul.mubr.bf16.gmra.mrb[4].mxu0 %v110_v3  ;;  %421 = vmatmul.mubr.bf16.gmra.mrb[4].mxu1 %v110_v3 }
 0x1a4   :  { %v359_v15 = vpop.f32.mrb[0].mxu0  ;;  %v412_v17 = vpop.f32.mrb[0].mxu1 }
 0x1a5   :  { %v360_v19 = vadd.f32 %v359_v15, %v148_v11  ;;  %v413_v20 = vadd.f32 %v412_v17, %v156_v12  ;;  %v361_v21 = vpop.f32.mrb[1].mxu0  ;;  %v414_v22 = vpop.f32.mrb[1].mxu1 }
 0x1a6   :  { %v362_v25 = vadd.f32 %v361_v21, %v3986_v13  ;;  %v415_v26 = vadd.f32 %v414_v22, %v3988_v14  ;;  %v363_v27 = vpop.f32.mrb[2].mxu0  ;;  %v416_v29 = vpop.f32.mrb[2].mxu1 }
 0x1a7   :  { %v439_v31 = vmul.f32 %v431_v16, %v360_v19  ;;  %v455_v32 = vmul.f32 %v447_v18, %v413_v20  ;;  %v364_v33 = vadd.f32 %v363_v27, %v148_v11  ;;  %v417_v35 = vadd.f32 %v416_v29, %v156_v12  ;;  %v365_v36 = vpop.f32.mrb[3].mxu0  ;;  %v418_v38 = vpop.f32.mrb[3].mxu1  ;;  %v436_v27 = vld [vmem:[%s4474_s1 + $0x28] sm:$0xff] }
 0x1a8   :  { %v456_v40 = vmul.f32 %v448_v23, %v415_v26  ;;  %v366_v41 = vadd.f32 %v365_v36, %v3986_v13  ;;  %v419_v42 = vadd.f32 %v418_v38, %v3988_v14  ;;  %v440_v43 = vmul.f32 %v432_v24, %v362_v25  ;;  %v452_v24 = vld [vmem:[#allocation2 + $0x28] sm:$0xff] }
 0x1a9   :  { %v4006_v44 = vadd.f32 %v455_v32, %v439_v31  ;;  %v441_v45 = vmul.f32 %v433_v28, %v364_v33  ;;  %v457_v46 = vmul.f32 %v449_v30, %v417_v35  ;;  %v473_v30 = vadd.s32 8, %v3977_v5 }
 0x1aa   :  { %v442_v47 = vmul.f32 %v434_v37, %v366_v41  ;;  %v458_v48 = vmul.f32 %v450_v39, %v419_v42  ;;  %v464_v49 = vadd.f32 %v456_v40, %v440_v43  ;;  %v4008_v50 = vpack.i.bf16 %v366_v41, %v362_v25 }
 0x1ab   :  { %v4010_v51 = vadd.f32 %v457_v46, %v441_v45  ;;  %708 = vrot.lane.b32.xlu0 %v4006_v44, %s3765_s14  ;;  %3135 = vmatprep.mubr.msk.f32.mxu0 %vm510_vm0, %v4006_v44  ;;  %v475_v31 = vand.u32 127, %v145_v4 }
 0x1ac   :  { %v466_v52 = vadd.f32 %v458_v48, %v442_v47 }
 0x1ad   :  { %710 = vrot.lane.b32.xlu1 %v4010_v51, %s3765_s14  ;;  %vm4048_vm1 = vcmp.ge.s32.totalorder %v473_v30, %v475_v31  ;;  %vm4053_vm3 = vcmp.ge.s32.totalorder %v3977_v5, %v475_v31 }
 0x1b0   :  { %v369_v53 = vpop.f32.mrb[4].mxu0  ;;  %v422_v55 = vpop.f32.mrb[4].mxu1 }
 0x1b1   :  { %v370_v57 = vadd.f32 %v369_v53, %v148_v11  ;;  %v423_v58 = vadd.f32 %v422_v55, %v156_v12  ;;  %v371_v59 = vpop.f32.mrb[5].mxu0  ;;  %v424_v60 = vpop.f32.mrb[5].mxu1 }
 0x1b2   :  { %v373_v61 = vpop.f32.mrb[6].mxu0  ;;  %v426_v63 = vpop.f32.mrb[6].mxu1  ;;  %v425_v23 = vadd.f32 %v424_v60, %v3988_v14  ;;  %v4038_v25 = vadd.f32 %v371_v59, %v3986_v13 }
 0x1b3   :  { %v443_v1 = vmul.f32 %v435_v54, %v370_v57  ;;  %v459_v2 = vmul.f32 %v451_v56, %v423_v58  ;;  %v374_v3 = vadd.f32 %v373_v61, %v148_v11  ;;  %v427_v6 = vadd.f32 %v426_v63, %v156_v12  ;;  %v4024_v7 = vpop.f32.mrb[7].mxu0  ;;  %v4026_v8 = vpop.f32.mrb[7].mxu1 }
 0x1b4   :  { %v460_v26 = vmul.f32 %v452_v24, %v425_v23  ;;  %v444_v28 = vmul.f32 %v436_v27, %v4038_v25 }
 0x1b5   :  { %v4028_v9 = vadd.f32 %v459_v2, %v443_v1  ;;  %v445_v10 = vmul.f32 %v437_v62, %v374_v3  ;;  %v461_v15 = vmul.f32 %v453_v0, %v427_v6 }
 0x1b6   :  { %v4044_v29 = vadd.f32 %v460_v26, %v444_v28 }
 0x1b7   :  { %v4030_v16 = vadd.f32 %v461_v15, %v445_v10 }
 0x1d6   :  { %478 = vxpose.xlu1.b32.start [1/2] (short) (narrow) %v464_v49, 64 }
 0x1da   :  { %479 = vxpose.xlu1.b32.end [2/2] (short) (narrow) %v466_v52, 64 }
 0x21d   :  { %v709_v12 = vpop.permute.xlu0 %708 }
 0x21f   :  { %v711_v17 = vpop.permute.xlu1 %710 }
 0x256   :  { %v494_v18 = vpop.trf.xlu1 }
 0x25a   :  { %v495_v19 = vpop.trf.xlu1 }
 0x25b   :  { %v3291_v20 = vpack.c.bf16 %v495_v19, %v494_v18 }
 0x25d   :  { %3292 = vmatprep.subr.bf16.mxu0 %v3291_v20 }
 0x25e   :  { %3294 = vmatpush3.bf16.msra.mxu0 %v3291_v20  ;;  %v496_v21 = vpop.trf.xlu1 }
 0x262   :  { %v497_v22 = vpop.trf.xlu1 }
 0x263   :  { %v3295_v11 = vpack.c.bf16 %v497_v22, %v496_v21 }
 0x265   :  { %3296 = vmatprep.subr.bf16.mxu0 %v3295_v11 }
 0x266   :  { %3298 = vmatpush3.bf16.msra.mxu0 %v3295_v11  ;;  %v498_v18 = vpop.trf.xlu1 }
 0x267   :  { %3304 = vmatprep.subr.bf16.mxu0 %v3291_v20 }
 0x269   :  { %3136 = vmatmul.mubr.msk.f32.vlgmr.msra.gmra.mrb[8].mxu0 %vm510_vm0, %v4010_v51 }
 0x26a   :  { %3306 = vmatpush3.bf16.msra.mxu0 %v3291_v20  ;;  %3153 = vmatprep.mubr.msk.f32.mxu0 %vm510_vm0, %v709_v12  ;;  %v499_v19 = vpop.trf.xlu1 }
 0x26b   :  { %3308 = vmatprep.subr.bf16.mxu0 %v3295_v11  ;;  %v4079_v31 = vpack.c.bf16 %v499_v19, %v498_v18 }
 0x26e   :  { %3310 = vmatpush3.bf16.msra.mxu0 %v3295_v11  ;;  %v500_v20 = vpop.trf.xlu1 }
 0x271   :  { %3154 = vmatmul.mubr.msk.f32.vlgmr.msra.gmra.mrb[10].mxu0 %vm510_vm0, %v711_v17 }
 0x272   :  { %v501_v21 = vpop.trf.xlu1 }
 0x33c   :  { %v3137_v32 = vpop.f32.mrb[8].mxu0 }
 0x33d   :  { %v593_v35 = vmul.f32 0.17677669, %v3137_v32  ;;  %v583_v36 = vpop.f32.mrb[9].mxu0 }
 0x33e   :  { %v592_v37 = vmul.f32 0.17677669, %v583_v36 }
 0x33f   :  { %v595_v39 = vsel %vm4048_vm1, %v593_v35, -1e+30 }
 0x340   :  { %v600_v40 = vsel %vm596_vm2, %v595_v39, -inf  ;;  %v594_v4 = vsel %vm4053_vm3, %v592_v37, -1e+30 }
 0x341   :  { %601 = vmax.xlane.f32.xlu0 %v600_v40  ;;  %v597_v42 = vsel %vm596_vm2, %v594_v4, -inf }
 0x344   :  { %v3155_v41 = vpop.f32.mrb[10].mxu0 }
 0x345   :  { %v782_v43 = vpop.f32.mrb[11].mxu0  ;;  %598 = vmax.xlane.f32.xlu0 %v597_v42  ;;  %v792_v45 = vmul.f32 0.17677669, %v3155_v41  ;;  %v4085_v41 = vpack.c.bf16 %v501_v21, %v500_v20 }
 0x346   :  { %v791_v46 = vmul.f32 0.17677669, %v782_v43 }
 0x347   :  { %v794_v48 = vsel %vm4048_vm1, %v792_v45, -1e+30 }
 0x348   :  { %v793_v5 = vsel %vm4053_vm3, %v791_v46, -1e+30  ;;  %v798_v49 = vsel %vm596_vm2, %v794_v48, -inf }
 0x349   :  { %v795_v47 = vsel %vm596_vm2, %v793_v5, -inf }
 0x34a   :  { %796 = vmax.xlane.f32.xlu0 %v795_v47 }
 0x34e   :  { %799 = vmax.xlane.f32.xlu0 %v798_v49 }
 0x3ce   :  { %v602_v52 = vpop.xlane.xlu0 %601 }
 0x3cf   :  { %v604_v53 = vsub.f32 %v595_v39, %v602_v52 }
 0x3d1   :  { %v607_v54 = vmul.f32 1.442695, %v604_v53 }
 0x3d2   :  { %v599_v55 = vpop.xlane.xlu0 %598 }
 0x3d3   :  { %3578 = vpow2.f32 %v607_v54  ;;  %v603_v56 = vsub.f32 %v594_v4, %v599_v55 }
 0x3d5   :  { %v605_v57 = vmul.f32 1.442695, %v603_v56 }
 0x3d7   :  { %3580 = vpow2.f32 %v605_v57  ;;  %v797_v62 = vpop.xlane.xlu0 %796 }
 0x3d8   :  { %v801_v1 = vsub.f32 %v793_v5, %v797_v62 }
 0x3da   :  { %v803_v3 = vmul.f32 1.442695, %v801_v1 }
 0x3db   :  { %v800_v63 = vpop.xlane.xlu0 %799 }
 0x3dc   :  { %v802_v0 = vsub.f32 %v794_v48, %v800_v63 }
 0x3dd   :  { %v3579_v58 = vpop.eup %3578 }
 0x3de   :  { %v612_v59 = vsel %vm596_vm2, %v3579_v58, 0.0  ;;  %v805_v2 = vmul.f32 1.442695, %v802_v0 }
 0x3df   :  { %613 = vadd.xlane.f32.xlu0 %v612_v59 }
 0x3e0   :  { %3582 = vpow2.f32 %v805_v2 }
 0x3e1   :  { %v3581_v60 = vpop.eup %3580  ;;  %3584 = vpow2.f32 %v803_v3 }
 0x3e2   :  { %v609_v61 = vsel %vm596_vm2, %v3581_v60, 0.0 }
 0x3e3   :  { %610 = vadd.xlane.f32.xlu1 %v609_v61 }
 0x3ea   :  { %v3583_v6 = vpop.eup %3582 }
 0x3eb   :  { %v810_v10 = vsel %vm596_vm2, %v3583_v6, 0.0  ;;  %v3585_v15 = vpop.eup %3584 }
 0x3ec   :  { %v807_v17 = vsel %vm596_vm2, %v3585_v15, 0.0 }
 0x3f5   :  { %3401 = vrot.lane.b32.xlu0 %v4008_v50, %s3762_s2 }
 0x414   :  { %811 = vadd.xlane.f32.xlu0 %v810_v10 }
 0x418   :  { %808 = vadd.xlane.f32.xlu0 %v807_v17 }
 0x42e   :  { %898 = vrot.lane.b32.xlu0 %v4006_v44, %s3762_s2 }
 0x432   :  { %900 = vrot.lane.b32.xlu0 %v4010_v51, %s3762_s2 }
 0x46c   :  { %v614_v22 = vpop.xlane.xlu0 %613 }
 0x46d   :  { %3586 = vrcp.f32 %v614_v22 }
 0x470   :  { %v611_v11 = vpop.xlane.xlu1 %610  ;;  %v3402_v12 = vpop.permute.xlu0 %3401 }
 0x471   :  { %3588 = vrcp.f32 %v611_v11  ;;  %v3404_v23 = vunpack.i.h.bf16 %v3402_v12  ;;  %v3403_v24 = vunpack.i.l.bf16 %v3402_v12 }
 0x473   :  { %v3299_v26 = vpack.c.bf16 %v3404_v23, %v3403_v24 }
 0x475   :  { %3300 = vmatprep.subr.bf16.mxu1 %v3299_v26 }
 0x476   :  { %3302 = vmatpush3.bf16.msra.mxu1 %v3299_v26 }
 0x477   :  { %3312 = vmatprep.subr.bf16.mxu1 %v3299_v26  ;;  %v3587_v27 = vpop.eup %3586 }
 0x478   :  { %v618_v32 = vmul.f32 %v3587_v27, %v3579_v58 }
 0x47b   :  { %v3589_v28 = vpop.eup %3588 }
 0x47c   :  { %v617_v30 = vmul.f32 %v3589_v28, %v3581_v60 }
 0x47e   :  { %3142 = vmatprep.mubr.msk.f32.mxu1 %vm596_vm2, %v617_v30 }
 0x47f   :  { %3143 = vmatmul.mubr.msk.f32.vlgmr.msra.gmra.mrb[8].mxu1 %vm596_vm2, %v618_v32 }
 0x480   :  { %3314 = vmatpush3.bf16.msra.mxu1 %v3299_v26 }
 0x481   :  { %3316 = vmatprep.subr.bf16.mxu1 %v4079_v31 }
 0x4a1   :  { %v812_v35 = vpop.xlane.xlu0 %811 }
 0x4a2   :  { %3590 = vrcp.f32 %v812_v35 }
 0x4a5   :  { %v809_v36 = vpop.xlane.xlu0 %808 }
 0x4a6   :  { %3592 = vrcp.f32 %v809_v36 }
 0x4a9   :  { %v899_v42 = vpop.permute.xlu0 %898 }
 0x4ac   :  { %v3591_v37 = vpop.eup %3590 }
 0x4ad   :  { %v816_v4 = vmul.f32 %v3591_v37, %v3583_v6  ;;  %v901_v43 = vpop.permute.xlu0 %900 }
 0x4b0   :  { %v3593_v39 = vpop.eup %3592 }
 0x4b1   :  { %v815_v40 = vmul.f32 %v3593_v39, %v3585_v15 }
 0x4b3   :  { %3160 = vmatprep.mubr.msk.f32.mxu1 %vm596_vm2, %v815_v40 }
 0x4b4   :  { %3161 = vmatmul.mubr.msk.f32.vlgmr.msra.gmra.mrb[10].mxu1 %vm596_vm2, %v816_v4 }
 0x4b5   :  { %3318 = vmatpush3.bf16.msra.mxu1 %v4079_v31  ;;  %3171 = vmatprep.mubr.msk.f32.mxu1 %vm510_vm0, %v899_v42 }
 0x4b6   :  { %3320 = vmatprep.subr.bf16.mxu1 %v4085_v41 }
 0x4b9   :  { %3322 = vmatpush3.bf16.msra.mxu1 %v4085_v41 }
 0x4bc   :  { %3172 = vmatmul.mubr.msk.f32.vlgmr.msra.gmra.mrb[12].mxu1 %vm510_vm0, %v901_v43 }
 0x552   :  { %v4093_v45 = vpop.f32.mrb[8].mxu1 }
 0x553   :  { %v4095_v46 = vpop.f32.mrb[9].mxu1 }
 0x587   :  { %v4097_v5 = vpop.f32.mrb[10].mxu1 }
 0x588   :  { %v4099_v47 = vpop.f32.mrb[11].mxu1 }
 0x589   :  { %v3420_v48 = vpack.i.bf16 %v4097_v5, %v4099_v47 }
 0x58f   :  { %v3173_v49 = vpop.f32.mrb[12].mxu1 }
 0x590   :  { %v982_v52 = vmul.f32 0.17677669, %v3173_v49  ;;  %v972_v53 = vpop.f32.mrb[13].mxu1 }
 0x591   :  { %v981_v54 = vmul.f32 0.17677669, %v972_v53 }
 0x592   :  { %v984_v55 = vsel %vm4048_vm1, %v982_v52, -1e+30 }
 0x593   :  { %v988_v56 = vsel %vm596_vm2, %v984_v55, -inf  ;;  %v983_v57 = vsel %vm4053_vm3, %v981_v54, -1e+30  ;;  %v376_v54 = vadd.f32 %v4024_v7, %v3986_v13 }
 0x594   :  { %989 = vmax.xlane.f32.xlu1 %v988_v56  ;;  %v985_v58 = vsel %vm596_vm2, %v983_v57, -inf  ;;  %v438_v56 = vld [vmem:[%s4474_s1 + $0x38] sm:$0xff] }
 0x595   :  { %986 = vmax.xlane.f32.xlu0 %v985_v58  ;;  %v446_v58 = vmul.f32 %v438_v56, %v376_v54 }
 0x5a5   :  { %3406 = vrot.lane.b32.xlu1 %v4008_v50, %s3766_s24 }
 0x5ab   :  { %1094 = vrot.lane.b32.xlu0 %v4006_v44, %s3766_s24 }
 0x621   :  { %v990_v59 = vpop.xlane.xlu1 %989 }
 0x622   :  { %v992_v60 = vsub.f32 %v984_v55, %v990_v59  ;;  %v987_v61 = vpop.xlane.xlu0 %986  ;;  %v429_v55 = vadd.f32 %v4026_v8, %v3988_v14 }
 0x623   :  { %v991_v62 = vsub.f32 %v983_v57, %v987_v61  ;;  %v454_v57 = vld [vmem:[#allocation2 + $0x38] sm:$0xff] }
 0x624   :  { %v995_v63 = vmul.f32 1.442695, %v992_v60  ;;  %v462_v59 = vmul.f32 %v454_v57, %v429_v55 }
 0x625   :  { %v993_v0 = vmul.f32 1.442695, %v991_v62  ;;  %v3407_v1 = vpop.permute.xlu1 %3406 }
 0x626   :  { %3594 = vpow2.f32 %v995_v63  ;;  %v3409_v2 = vunpack.i.h.bf16 %v3407_v1  ;;  %v3408_v3 = vunpack.i.l.bf16 %v3407_v1  ;;  %v1095_v11 = vpop.permute.xlu0 %1094  ;;  %v470_v60 = vadd.f32 %v462_v59, %v446_v58 }
 0x627   :  { %3596 = vpow2.f32 %v993_v0 }
 0x628   :  { %v3323_v6 = vpack.c.bf16 %v3409_v2, %v3408_v3 }
 0x62a   :  { %3324 = vmatprep.subr.bf16.mxu0 %v3323_v6  ;;  %3336 = vmatprep.subr.bf16.mxu1 %v3323_v6 }
 0x62b   :  { %3326 = vmatpush3.bf16.msra.mxu0 %v3323_v6  ;;  %3338 = vmatpush3.bf16.msra.mxu1 %v3323_v6 }
 0x62c   :  { %3328 = vmatprep.subr.bf16.mxu0 %v4079_v31 }
 0x630   :  { %v3595_v50 = vpop.eup %3594 }
 0x631   :  { %v1000_v44 = vsel %vm596_vm2, %v3595_v50, 0.0  ;;  %v3597_v10 = vpop.eup %3596 }
 0x632   :  { %1001 = vadd.xlane.f32.xlu1 %v1000_v44  ;;  %v997_v15 = vsel %vm596_vm2, %v3597_v10, 0.0 }
 0x636   :  { %998 = vadd.xlane.f32.xlu1 %v997_v15 }
 0x647   :  { %1096 = vrot.lane.b32.xlu1 %v4010_v51, %s3766_s24 }
 0x6bf   :  { %v1002_v17 = vpop.xlane.xlu1 %1001 }
 0x6c0   :  { %3598 = vrcp.f32 %v1002_v17 }
 0x6c3   :  { %v999_v18 = vpop.xlane.xlu1 %998 }
 0x6c4   :  { %3600 = vrcp.f32 %v999_v18 }
 0x6c7   :  { %v1097_v51 = vpop.permute.xlu1 %1096 }
 0x6ca   :  { %v3599_v19 = vpop.eup %3598 }
 0x6cb   :  { %v1006_v22 = vmul.f32 %v3599_v19, %v3595_v50 }
 0x6ce   :  { %v3601_v20 = vpop.eup %3600 }
 0x6cf   :  { %v1005_v21 = vmul.f32 %v3601_v20, %v3597_v10 }
 0x6d1   :  { %3178 = vmatprep.mubr.msk.f32.mxu0 %vm596_vm2, %v1005_v21 }
 0x6d2   :  { %3179 = vmatmul.mubr.msk.f32.vlgmr.msra.gmra.mrb[12].mxu0 %vm596_vm2, %v1006_v22 }
 0x6d3   :  { %3330 = vmatpush3.bf16.msra.mxu0 %v4079_v31  ;;  %3189 = vmatprep.mubr.msk.f32.mxu0 %vm510_vm0, %v1095_v11  ;;  %v4166_v11 = vpack.i.bf16 %v376_v54, %v4038_v25 }
 0x6d4   :  { %3332 = vmatprep.subr.bf16.mxu0 %v4085_v41 }
 0x6d7   :  { %3334 = vmatpush3.bf16.msra.mxu0 %v4085_v41 }
 0x6da   :  { %3190 = vmatmul.mubr.msk.f32.vlgmr.msra.gmra.mrb[14].mxu0 %vm510_vm0, %v1097_v51 }
 0x7a5   :  { %v4125_v12 = vpop.f32.mrb[12].mxu0 }
 0x7a6   :  { %v4127_v23 = vpop.f32.mrb[13].mxu0 }
 0x7a7   :  { %v3425_v24 = vpack.i.bf16 %v4125_v12, %v4127_v23 }
 0x7ad   :  { %v3191_v26 = vpop.f32.mrb[14].mxu0 }
 0x7ae   :  { %v1178_v27 = vmul.f32 0.17677669, %v3191_v26  ;;  %v1168_v28 = vpop.f32.mrb[15].mxu0 }
 0x7af   :  { %v1177_v30 = vmul.f32 0.17677669, %v1168_v28 }
 0x7b0   :  { %v1180_v31 = vsel %vm4048_vm1, %v1178_v27, -1e+30 }
 0x7b1   :  { %v1184_v32 = vsel %vm596_vm2, %v1180_v31, -inf  ;;  %v1179_v35 = vsel %vm4053_vm3, %v1177_v30, -1e+30 }
 0x7b2   :  { %1185 = vmax.xlane.f32.xlu0 %v1184_v32  ;;  %v1181_v36 = vsel %vm596_vm2, %v1179_v35, -inf }
 0x7b3   :  { %1182 = vmax.xlane.f32.xlu1 %v1181_v36 }
 0x83f   :  { %v1186_v37 = vpop.xlane.xlu0 %1185 }
 0x840   :  { %v1188_v39 = vsub.f32 %v1180_v31, %v1186_v37  ;;  %v1183_v40 = vpop.xlane.xlu1 %1182 }
 0x841   :  { %v1187_v4 = vsub.f32 %v1179_v35, %v1183_v40 }
 0x842   :  { %v1191_v41 = vmul.f32 1.442695, %v1188_v39 }
 0x843   :  { %v1189_v42 = vmul.f32 1.442695, %v1187_v4 }
 0x844   :  { %3602 = vpow2.f32 %v1191_v41 }
 0x845   :  { %3604 = vpow2.f32 %v1189_v42 }
 0x84e   :  { %v3603_v43 = vpop.eup %3602 }
 0x84f   :  { %v3605_v49 = vpop.eup %3604  ;;  %v1196_v52 = vsel %vm596_vm2, %v3603_v43, 0.0 }
 0x850   :  { %1197 = vadd.xlane.f32.xlu1 %v1196_v52  ;;  %v1193_v53 = vsel %vm596_vm2, %v3605_v49, 0.0 }
 0x851   :  { %1194 = vadd.xlane.f32.xlu0 %v1193_v53 }
 0x87e   :  { %1316 = vxpose.xlu0.b32.start [1/2] (short) (narrow) %v4044_v29, 64 }
 0x882   :  { %1317 = vxpose.xlu0.b32.end [2/2] (short) (narrow) %v470_v60, 64 }
 0x8dd   :  { %v1198_v61 = vpop.xlane.xlu1 %1197 }
 0x8de   :  { %3606 = vrcp.f32 %v1198_v61  ;;  %v1195_v62 = vpop.xlane.xlu0 %1194 }
 0x8df   :  { %3608 = vrcp.f32 %v1195_v62 }
 0x8e8   :  { %v3607_v63 = vpop.eup %3606 }
 0x8e9   :  { %v3609_v13 = vpop.eup %3608  ;;  %v1202_v0 = vmul.f32 %v3607_v63, %v3603_v43 }
 0x8ea   :  { %v1201_v7 = vmul.f32 %v3609_v13, %v3605_v49 }
 0x8ec   :  { %3196 = vmatprep.mubr.msk.f32.mxu1 %vm596_vm2, %v1201_v7 }
 0x8ed   :  { %3197 = vmatmul.mubr.msk.f32.vlgmr.msra.gmra.mrb[14].mxu1 %vm596_vm2, %v1202_v0 }
 0x8ee   :  { %3207 = vmatprep.mubr.msk.f32.mxu1 %vm510_vm0, %v4028_v9 }
 0x8fe   :  { %v1332_v14 = vpop.trf.xlu0 }
 0x902   :  { %v1333_v8 = vpop.trf.xlu0 }
 0x903   :  { %v3339_v29 = vpack.c.bf16 %v1333_v8, %v1332_v14 }
 0x905   :  { %3340 = vmatprep.subr.bf16.mxu1 %v3339_v29 }
 0x906   :  { %v1334_v1 = vpop.trf.xlu0  ;;  %3342 = vmatpush3.bf16.msra.mxu1 %v3339_v29 }
 0x90a   :  { %v1335_v2 = vpop.trf.xlu0 }
 0x90b   :  { %v3343_v3 = vpack.c.bf16 %v1335_v2, %v1334_v1 }
 0x90d   :  { %3344 = vmatprep.subr.bf16.mxu1 %v3343_v3 }
 0x90e   :  { %3346 = vmatpush3.bf16.msra.mxu1 %v3343_v3  ;;  %v1336_v56 = vpop.trf.xlu0 }
 0x911   :  { %3208 = vmatmul.mubr.msk.f32.vlgmr.msra.gmra.mrb[16].mxu1 %vm510_vm0, %v4030_v16 }
 0x912   :  { %v1337_v57 = vpop.trf.xlu0 }
 0x913   :  { %v4180_v58 = vpack.c.bf16 %v1337_v57, %v1336_v56 }
 0x9c0   :  { %v4153_v6 = vpop.f32.mrb[14].mxu1 }
 0x9c1   :  { %v4155_v50 = vpop.f32.mrb[15].mxu1 }
 0x9c2   :  { %v3435_v44 = vpack.i.bf16 %v4153_v6, %v4155_v50 }
 0x9e4   :  { %v3209_v10 = vpop.f32.mrb[16].mxu1 }
 0x9e5   :  { %v1420_v15 = vpop.f32.mrb[17].mxu1  ;;  %v1430_v17 = vmul.f32 0.17677669, %v3209_v10 }
 0x9e6   :  { %v1429_v18 = vmul.f32 0.17677669, %v1420_v15 }
 0x9e7   :  { %v1432_v21 = vsel %vm4048_vm1, %v1430_v17, -1e+30 }
 0x9e8   :  { %v1431_v19 = vsel %vm4053_vm3, %v1429_v18, -1e+30  ;;  %v1436_v22 = vsel %vm596_vm2, %v1432_v21, -inf }
 0x9e9   :  { %v1433_v20 = vsel %vm596_vm2, %v1431_v19, -inf }
 0x9ea   :  { %1434 = vmax.xlane.f32.xlu1 %v1433_v20 }
 0x9ee   :  { %1437 = vmax.xlane.f32.xlu1 %v1436_v22 }
 0x9ff   :  { %3411 = vrot.lane.b32.xlu1 %v4166_v11, %s3762_s2 }
 0xa03   :  { %1544 = vrot.lane.b32.xlu1 %v4028_v9, %s3765_s14 }
 0xa77   :  { %v1435_v51 = vpop.xlane.xlu1 %1434 }
 0xa78   :  { %v1439_v26 = vsub.f32 %v1431_v19, %v1435_v51 }
 0xa7a   :  { %v1441_v30 = vmul.f32 1.442695, %v1439_v26 }
 0xa7b   :  { %v1438_v27 = vpop.xlane.xlu1 %1437 }
 0xa7c   :  { %v1440_v28 = vsub.f32 %v1432_v21, %v1438_v27 }
 0xa7e   :  { %v1443_v31 = vmul.f32 1.442695, %v1440_v28 }
 0xa7f   :  { %v3412_v32 = vpop.permute.xlu1 %3411 }
 0xa80   :  { %3610 = vpow2.f32 %v1443_v31  ;;  %v3414_v35 = vunpack.i.h.bf16 %v3412_v32  ;;  %v3413_v36 = vunpack.i.l.bf16 %v3412_v32 }
 0xa81   :  { %3612 = vpow2.f32 %v1441_v30 }
 0xa82   :  { %v3347_v37 = vpack.c.bf16 %v3414_v35, %v3413_v36 }
 0xa83   :  { %v1545_v41 = vpop.permute.xlu1 %1544 }
 0xa84   :  { %3348 = vmatprep.subr.bf16.mxu0 %v3347_v37  ;;  %3360 = vmatprep.subr.bf16.mxu1 %v3347_v37 }
 0xa85   :  { %3350 = vmatpush3.bf16.msra.mxu0 %v3347_v37  ;;  %3362 = vmatpush3.bf16.msra.mxu1 %v3347_v37 }
 0xa86   :  { %3352 = vmatprep.subr.bf16.mxu0 %v3339_v29  ;;  %3364 = vmatprep.subr.bf16.mxu1 %v4180_v58 }
 0xa8a   :  { %v3611_v25 = vpop.eup %3610 }
 0xa8b   :  { %v1448_v39 = vsel %vm596_vm2, %v3611_v25, 0.0  ;;  %v3613_v40 = vpop.eup %3612 }
 0xa8c   :  { %1449 = vadd.xlane.f32.xlu1 %v1448_v39  ;;  %v1445_v4 = vsel %vm596_vm2, %v3613_v40, 0.0 }
 0xa90   :  { %1446 = vadd.xlane.f32.xlu1 %v1445_v4 }
 0xaa1   :  { %1546 = vrot.lane.b32.xlu1 %v4030_v16, %s3765_s14 }
 0xb19   :  { %v1450_v42 = vpop.xlane.xlu1 %1449 }
 0xb1a   :  { %3614 = vrcp.f32 %v1450_v42 }
 0xb1d   :  { %v1447_v43 = vpop.xlane.xlu1 %1446 }
 0xb1e   :  { %3616 = vrcp.f32 %v1447_v43 }
 0xb21   :  { %v1547_v55 = vpop.permute.xlu1 %1546 }
 0xb24   :  { %v3615_v49 = vpop.eup %3614 }
 0xb25   :  { %v1454_v54 = vmul.f32 %v3615_v49, %v3611_v25 }
 0xb28   :  { %v3617_v52 = vpop.eup %3616 }
 0xb29   :  { %v1453_v53 = vmul.f32 %v3617_v52, %v3613_v40 }
 0xb2b   :  { %3214 = vmatprep.mubr.msk.f32.mxu0 %vm596_vm2, %v1453_v53 }
 0xb2c   :  { %3215 = vmatmul.mubr.msk.f32.vlgmr.msra.gmra.mrb[16].mxu0 %vm596_vm2, %v1454_v54 }
 0xb2d   :  { %3354 = vmatpush3.bf16.msra.mxu0 %v3339_v29  ;;  %3225 = vmatprep.mubr.msk.f32.mxu0 %vm510_vm0, %v1545_v41  ;;  %v1338_v29 = vpop.trf.xlu0 }
 0xb2e   :  { %3356 = vmatprep.subr.bf16.mxu0 %v3343_v3 }
 0xb31   :  { %3358 = vmatpush3.bf16.msra.mxu0 %v3343_v3  ;;  %v1339_v1 = vpop.trf.xlu0 }
 0xb32   :  { %v3367_v35 = vpack.c.bf16 %v1339_v1, %v1338_v29 }
 0xb34   :  { %3226 = vmatmul.mubr.msk.f32.vlgmr.msra.gmra.mrb[18].mxu0 %vm510_vm0, %v1547_v55 }
 0xbff   :  { %v4183_v59 = vpop.f32.mrb[16].mxu0 }
 0xc00   :  { %v4185_v60 = vpop.f32.mrb[17].mxu0 }
 0xc07   :  { %v3227_v61 = vpop.f32.mrb[18].mxu0 }
 0xc08   :  { %v1628_v62 = vmul.f32 0.17677669, %v3227_v61  ;;  %v1618_v63 = vpop.f32.mrb[19].mxu0 }
 0xc09   :  { %v1627_v13 = vmul.f32 0.17677669, %v1618_v63 }
 0xc0a   :  { %v1630_v7 = vsel %vm4048_vm1, %v1628_v62, -1e+30 }
 0xc0b   :  { %v1634_v0 = vsel %vm596_vm2, %v1630_v7, -inf  ;;  %v1629_v14 = vsel %vm4053_vm3, %v1627_v13, -1e+30 }
 0xc0c   :  { %1635 = vmax.xlane.f32.xlu0 %v1634_v0  ;;  %v1631_v8 = vsel %vm596_vm2, %v1629_v14, -inf }
 0xc0d   :  { %1632 = vmax.xlane.f32.xlu1 %v1631_v8 }
 0xc1e   :  { %1734 = vrot.lane.b32.xlu1 %v4028_v9, %s3762_s2 }
 0xc99   :  { %v1636_v2 = vpop.xlane.xlu0 %1635 }
 0xc9a   :  { %v1638_v3 = vsub.f32 %v1630_v7, %v1636_v2  ;;  %v1633_v10 = vpop.xlane.xlu1 %1632 }
 0xc9b   :  { %v1637_v15 = vsub.f32 %v1629_v14, %v1633_v10 }
 0xc9c   :  { %v1641_v17 = vmul.f32 1.442695, %v1638_v3 }
 0xc9d   :  { %v1639_v18 = vmul.f32 1.442695, %v1637_v15 }
 0xc9e   :  { %3618 = vpow2.f32 %v1641_v17  ;;  %v1735_v51 = vpop.permute.xlu1 %1734 }
 0xc9f   :  { %3620 = vpow2.f32 %v1639_v18 }
 0xca8   :  { %v3619_v19 = vpop.eup %3618 }
 0xca9   :  { %v1646_v20 = vsel %vm596_vm2, %v3619_v19, 0.0  ;;  %v3621_v21 = vpop.eup %3620 }
 0xcaa   :  { %1647 = vadd.xlane.f32.xlu1 %v1646_v20  ;;  %v1643_v22 = vsel %vm596_vm2, %v3621_v21, 0.0 }
 0xcae   :  { %1644 = vadd.xlane.f32.xlu1 %v1643_v22 }
 0xcbf   :  { %1736 = vrot.lane.b32.xlu1 %v4030_v16, %s3762_s2 }
 0xd37   :  { %v1648_v26 = vpop.xlane.xlu1 %1647 }
 0xd38   :  { %3622 = vrcp.f32 %v1648_v26 }
 0xd3b   :  { %v1645_v27 = vpop.xlane.xlu1 %1644 }
 0xd3c   :  { %3624 = vrcp.f32 %v1645_v27 }
 0xd3f   :  { %v1737_v36 = vpop.permute.xlu1 %1736 }
 0xd42   :  { %v3623_v28 = vpop.eup %3622 }
 0xd43   :  { %v1652_v32 = vmul.f32 %v3623_v28, %v3619_v19 }
 0xd46   :  { %v3625_v30 = vpop.eup %3624 }
 0xd47   :  { %v1651_v31 = vmul.f32 %v3625_v30, %v3621_v21 }
 0xd49   :  { %3232 = vmatprep.mubr.msk.f32.mxu1 %vm596_vm2, %v1651_v31 }
 0xd4a   :  { %3233 = vmatmul.mubr.msk.f32.vlgmr.msra.gmra.mrb[18].mxu1 %vm596_vm2, %v1652_v32 }
 0xd4b   :  { %3366 = vmatpush3.bf16.msra.mxu1 %v4180_v58  ;;  %3243 = vmatprep.mubr.msk.f32.mxu1 %vm510_vm0, %v1735_v51 }
 0xd4c   :  { %3368 = vmatprep.subr.bf16.mxu1 %v3367_v35 }
 0xd4f   :  { %3370 = vmatpush3.bf16.msra.mxu1 %v3367_v35 }
 0xd52   :  { %3244 = vmatmul.mubr.msk.f32.vlgmr.msra.gmra.mrb[20].mxu1 %vm510_vm0, %v1737_v36 }
 0xe1d   :  { %v4204_v37 = vpop.f32.mrb[18].mxu1 }
 0xe1e   :  { %v4206_v25 = vpop.f32.mrb[19].mxu1 }
 0xe1f   :  { %v3430_v39 = vpack.i.bf16 %v4204_v37, %v4206_v25 }
 0xe25   :  { %v3245_v40 = vpop.f32.mrb[20].mxu1 }
 0xe26   :  { %v1818_v4 = vmul.f32 0.17677669, %v3245_v40  ;;  %v1808_v41 = vpop.f32.mrb[21].mxu1 }
 0xe27   :  { %v1817_v42 = vmul.f32 0.17677669, %v1808_v41 }
 0xe28   :  { %v1820_v43 = vsel %vm4048_vm1, %v1818_v4, -1e+30 }
 0xe29   :  { %v1824_v49 = vsel %vm596_vm2, %v1820_v43, -inf  ;;  %v1819_v52 = vsel %vm4053_vm3, %v1817_v42, -1e+30 }
 0xe2a   :  { %1825 = vmax.xlane.f32.xlu0 %v1824_v49  ;;  %v1821_v53 = vsel %vm596_vm2, %v1819_v52, -inf }
 0xe2b   :  { %1822 = vmax.xlane.f32.xlu1 %v1821_v53 }
 0xe3c   :  { %1930 = vrot.lane.b32.xlu1 %v4028_v9, %s3766_s24 }
 0xeb7   :  { %v1826_v54 = vpop.xlane.xlu0 %1825 }
 0xeb8   :  { %v1828_v55 = vsub.f32 %v1820_v43, %v1826_v54  ;;  %v1823_v56 = vpop.xlane.xlu1 %1822 }
 0xeb9   :  { %v1827_v57 = vsub.f32 %v1819_v52, %v1823_v56 }
 0xeba   :  { %v1831_v61 = vmul.f32 1.442695, %v1828_v55 }
 0xebb   :  { %v1829_v62 = vmul.f32 1.442695, %v1827_v57 }
 0xebc   :  { %3626 = vpow2.f32 %v1831_v61  ;;  %v3498_v61 = vld [vmem:[#allocation5] sm:$0xff]  }
 0xebd   :  { %3628 = vpow2.f32 %v1829_v62  ;;  %v3499_v62 = vld [vmem:[#allocation5 + $0x8] sm:$0xff]  }
 0xec6   :  { %v3627_v63 = vpop.eup %3626 }
 0xec7   :  { %v1836_v13 = vsel %vm596_vm2, %v3627_v63, 0.0  ;;  %v3629_v7 = vpop.eup %3628 }
 0xec8   :  { %1837 = vadd.xlane.f32.xlu0 %v1836_v13  ;;  %v1833_v0 = vsel %vm596_vm2, %v3629_v7, 0.0  ;;  %v3501_v13 = vld [vmem:[#allocation5 + $0x18] sm:$0xff]  }
 0xecc   :  { %1834 = vadd.xlane.f32.xlu0 %v1833_v0  ;;  %v3503_v0 = vld [vmem:[#allocation5 + $0x28] sm:$0xff]  }
 0xee2   :  { %3416 = vrot.lane.b32.xlu0 %v4166_v11, %s3766_s24 }
 0xee6   :  { %1932 = vrot.lane.b32.xlu0 %v4030_v16, %s3766_s24  ;;  %v1931_v16 = vpop.permute.xlu1 %1930 }
 0xf55   :  { %v1838_v9 = vpop.xlane.xlu0 %1837 }
 0xf56   :  { %3630 = vrcp.f32 %v1838_v9  ;;  %v3504_v9 = vld [vmem:[#allocation5 + $0x30] sm:$0xff]  }
 0xf59   :  { %v1835_v14 = vpop.xlane.xlu0 %1834 }
 0xf5a   :  { %3632 = vrcp.f32 %v1835_v14  ;;  %v3505_v14 = vld [vmem:[#allocation5 + $0x38] sm:$0xff]  }
 0xf5d   :  { %v3417_v8 = vpop.permute.xlu0 %3416 }
 0xf5e   :  { %v3419_v29 = vunpack.i.h.bf16 %v3417_v8  ;;  %v3418_v1 = vunpack.i.l.bf16 %v3417_v8 }
 0xf60   :  { %v3371_v2 = vpack.c.bf16 %v3419_v29, %v3418_v1  ;;  %v3631_v3 = vpop.eup %3630 }
 0xf61   :  { %v1842_v15 = vmul.f32 %v3631_v3, %v3627_v63  ;;  %v1933_v17 = vpop.permute.xlu0 %1932  ;;  %v3500_v63 = vld [vmem:[#allocation5 + $0x10] sm:$0xff]  }
 0xf62   :  { %3372 = vmatprep.subr.bf16.mxu0 %v3371_v2  ;;  %3384 = vmatprep.subr.bf16.mxu1 %v3371_v2 }
 0xf63   :  { %3374 = vmatpush3.bf16.msra.mxu0 %v3371_v2  ;;  %3386 = vmatpush3.bf16.msra.mxu1 %v3371_v2 }
 0xf64   :  { %v3633_v10 = vpop.eup %3632  ;;  %3376 = vmatprep.subr.bf16.mxu0 %v4180_v58  ;;  %3271 = vmatprep.subr.bf16.mxu1 %v3498_v61 }
 0xf65   :  { %v1841_v11 = vmul.f32 %v3633_v10, %v3629_v7  ;;  %v3502_v7 = vld [vmem:[#allocation5 + $0x20] sm:$0xff]  }
 0xf67   :  { %3250 = vmatprep.mubr.msk.f32.mxu0 %vm596_vm2, %v1841_v11 }
 0xf68   :  { %3251 = vmatmul.mubr.msk.f32.vlgmr.msra.gmra.mrb[20].mxu0 %vm596_vm2, %v1842_v15 }
 0xf69   :  { %3378 = vmatpush3.bf16.msra.mxu0 %v4180_v58  ;;  %3261 = vmatprep.mubr.msk.f32.mxu0 %vm510_vm0, %v1931_v16 }
 0xf6a   :  { %3380 = vmatprep.subr.bf16.mxu0 %v3367_v35 }
 0xf6d   :  { %3382 = vmatpush3.bf16.msra.mxu0 %v3367_v35 }
 0xf70   :  { %3262 = vmatmul.mubr.msk.f32.vlgmr.msra.gmra.mrb[22].mxu0 %vm510_vm0, %v1933_v17 }
 0xf71   :  { %2534 = vmatprep.mubr.bf16.mxu0 %v3764_v34 }
0x103b   :  { %v3252_v18 = vpop.f32.mrb[20].mxu0 }
0x103c   :  { %v1921_v19 = vpop.f32.mrb[21].mxu0 }
0x103d   :  { %v3440_v20 = vpack.i.bf16 %v3252_v18, %v1921_v19 }
0x1043   :  { %v3263_v21 = vpop.f32.mrb[22].mxu0 }
0x1044   :  { %v2014_v22 = vmul.f32 0.17677669, %v3263_v21  ;;  %v2004_v51 = vpop.f32.mrb[23].mxu0 }
0x1045   :  { %v2013_v26 = vmul.f32 0.17677669, %v2004_v51 }
0x1046   :  { %v2016_v27 = vsel %vm4048_vm1, %v2014_v22, -1e+30 }
0x1047   :  { %v2020_v58 = vsel %vm596_vm2, %v2016_v27, -inf  ;;  %v2015_v28 = vsel %vm4053_vm3, %v2013_v26, -1e+30 }
0x1048   :  { %2021 = vmax.xlane.f32.xlu1 %v2020_v58  ;;  %v2017_v30 = vsel %vm596_vm2, %v2015_v28, -inf }
0x1049   :  { %2018 = vmax.xlane.f32.xlu0 %v2017_v30  ;;  %v3511_v30 = vld [vmem:[%s4481_s8 + $0xc] ss:$16 sps:$4 sm:$0xff]  }
0x1059   :  { %3426 = vrot.lane.b32.xlu1 %v3425_v24, %s3762_s2 }
0x105d   :  { %3431 = vrot.lane.b32.xlu1 %v3430_v39, %s3766_s24 }
0x1061   :  { %3441 = vrot.lane.b32.xlu1 %v3440_v20, %s3762_s2 }
0x10d5   :  { %v2022_v33 = vpop.xlane.xlu1 %2021 }
0x10d6   :  { %v2024_v31 = vsub.f32 %v2016_v27, %v2022_v33  ;;  %v2019_v38 = vpop.xlane.xlu0 %2018  ;;  %v3514_v33 = vld [vmem:[%s4481_s8 + $0x24] ss:$16 sps:$4 sm:$0xff]  }
0x10d7   :  { %v2023_v32 = vsub.f32 %v2015_v28, %v2019_v38  ;;  %v3509_v28 = vld [vmem:[%s4481_s8 + $0x8] ss:$16 sps:$4 sm:$0xff]   ;;  %v3512_v38 = vld [vmem:[%s4481_s8 + $0x20] ss:$16 sps:$4 sm:$0xff]  }
0x10d8   :  { %v2027_v35 = vmul.f32 1.442695, %v2024_v31  ;;  %v3517_v31 = vld [vmem:[%s4481_s8 + $0x2c] ss:$16 sps:$4 sm:$0xff]  }
0x10d9   :  { %v2025_v36 = vmul.f32 1.442695, %v2023_v32  ;;  %v3427_v39 = vpop.permute.xlu1 %3426  ;;  %v3515_v32 = vld [vmem:[%s4481_s8 + $0x28] ss:$16 sps:$4 sm:$0xff]  }
0x10da   :  { %v3429_v47 = vunpack.i.h.bf16 %v3427_v39 }
0x10db   :  { %3634 = vpow2.f32 %v2025_v36  ;;  %v3523_v36 = vld [vmem:[%s4481_s8 + $0x4c] ss:$16 sps:$4 sm:$0xff]  }
0x10dc   :  { %3636 = vpow2.f32 %v2027_v35  ;;  %v3520_v35 = vld [vmem:[%s4481_s8 + $0x44] ss:$16 sps:$4 sm:$0xff]  }
0x10dd   :  { %v3432_v2 = vpop.permute.xlu1 %3431 }
0x10de   :  { %v3434_v10 = vunpack.i.h.bf16 %v3432_v2  ;;  %v3433_v11 = vunpack.i.l.bf16 %v3432_v2  ;;  %v3551_v2 = vld [vmem:[%s4481_s8 + $0xe8] ss:$16 sps:$4 sm:$0xff]  }
0x10e0   :  { %v2145_v18 = vsel %vm510_vm0, %v4183_v59, %v3434_v10  ;;  %v2144_v19 = vsel %vm510_vm0, %v4185_v60, %v3433_v11  ;;  %v3506_v59 = vld [vmem:[%s4481_s8] ss:$16 sps:$4 sm:$0xff]   ;;  %v3508_v60 = vld [vmem:[%s4481_s8 + $0x4] ss:$16 sps:$4 sm:$0xff]  }
0x10e1   :  { %v3442_v3 = vpop.permute.xlu1 %3441  ;;  %2502 = vmatprep.subr.bf16.mxu0 %v3508_v60 }
0x10e2   :  { %v3444_v15 = vunpack.i.h.bf16 %v3442_v3  ;;  %v3443_v16 = vunpack.i.l.bf16 %v3442_v3  ;;  %2503 = vmatpush1.bf16.msra.mxu0 %v3506_v59  ;;  %v2952_v59 = vld [vmem:[%s4480_s7] ss:$0 sm:$0xff] }
0x10e3   :  { %2504 = vmatprep.subr.bf16.mxu0 %v3514_v33 }
0x10e4   :  { %v2146_v22 = vsel %vm1310_vm5, %v2144_v19, %v3443_v16  ;;  %v2147_v51 = vsel %vm1310_vm5, %v2145_v18, %v3444_v15 }
0x10e5   :  { %v3635_v40 = vpop.eup %3634 }
0x10e6   :  { %v2029_v4 = vsel %vm596_vm2, %v3635_v40, 0.0  ;;  %v3637_v12 = vpop.eup %3636  ;;  %2505 = vmatpush1.bf16.msra.mxu0 %v3512_v38 }
0x10e7   :  { %2030 = vadd.xlane.f32.xlu0 %v2029_v4  ;;  %v2032_v23 = vsel %vm596_vm2, %v3637_v12, 0.0  ;;  %2506 = vmatprep.subr.bf16.mxu0 %v3520_v35  ;;  %v3521_v4 = vld [vmem:[%s4481_s8 + $0x48] ss:$16 sps:$4 sm:$0xff]  }
0x10eb   :  { %2033 = vadd.xlane.f32.xlu0 %v2032_v23 }
0x1101   :  { %3421 = vrot.lane.b32.xlu0 %v3420_v48, %s3766_s24  ;;  %v3428_v48 = vunpack.i.l.bf16 %v3427_v39 }
0x1105   :  { %3436 = vrot.lane.b32.xlu0 %v3435_v44, %s3765_s14 }
0x1174   :  { %v2031_v24 = vpop.xlane.xlu0 %2030 }
0x1175   :  { %3638 = vrcp.f32 %v2031_v24  ;;  %v3682_v24 = vld [vmem:[%s4473_s0] sm:$0xff] }
0x1178   :  { %v2034_v37 = vpop.xlane.xlu0 %2033 }
0x1179   :  { %3640 = vrcp.f32 %v2034_v37 }
0x117c   :  { %v3422_v25 = vpop.permute.xlu0 %3421 }
0x117d   :  { %v3424_v41 = vunpack.i.h.bf16 %v3422_v25  ;;  %v3423_v42 = vunpack.i.l.bf16 %v3422_v25 }
0x117f   :  { %v3639_v43 = vpop.eup %3638  ;;  %v1309_v49 = vsel %vm510_vm0, %v4093_v45, %v3424_v41  ;;  %v1308_v5 = vsel %vm510_vm0, %v4095_v46, %v3423_v42  ;;  %v3683_v41 = vld [vmem:[%s4473_s0 + $0x18] sm:$0xff] }
0x1180   :  { %v3437_v52 = vpop.permute.xlu0 %3436  ;;  %v2037_v6 = vmul.f32 %v3639_v43, %v3635_v40  ;;  %v1311_v53 = vsel %vm1310_vm5, %v1308_v5, %v3428_v48  ;;  %v1312_v54 = vsel %vm1310_vm5, %v1309_v49, %v3429_v47  ;;  %v3518_v40 = vld [vmem:[%s4481_s8 + $0x40] ss:$16 sps:$4 sm:$0xff]   ;;  %v3684_v43 = vld [vmem:[%s4473_s0 + $0x8] sm:$0xff] }
0x1181   :  { %v3439_v50 = vunpack.i.h.bf16 %v3437_v52  ;;  %v3438_v44 = vunpack.i.l.bf16 %v3437_v52  ;;  %2507 = vmatpush1.bf16.msra.mxu0 %v3518_v40  ;;  %v3685_v47 = vld [vmem:[%s4473_s0 + $0x10] sm:$0xff] }
0x1182   :  { %3268 = vmatprep.mubr.msk.f32.mxu1 %vm596_vm2, %v2037_v6 }
0x1183   :  { %v3641_v55 = vpop.eup %3640  ;;  %v1314_v45 = vsel %vm1313_vm4, %v1311_v53, %v3438_v44  ;;  %v1315_v56 = vsel %vm1313_vm4, %v1312_v54, %v3439_v50  ;;  %v3526_v44 = vld [vmem:[%s4481_s8 + $0x64] ss:$16 sps:$4 sm:$0xff]   ;;  %v3529_v53 = vld [vmem:[%s4481_s8 + $0x6c] ss:$16 sps:$4 sm:$0xff]   ;;  %v3524_v54 = vld [vmem:[%s4481_s8 + $0x60] ss:$16 sps:$4 sm:$0xff]  }
0x1184   :  { %v2038_v46 = vmul.f32 %v3641_v55, %v3637_v12  ;;  %v2150_v57 = vpack.c.bf16 %v1315_v56, %v1314_v45  ;;  %v3527_v55 = vld [vmem:[%s4481_s8 + $0x68] ss:$16 sps:$4 sm:$0xff]   ;;  %2508 = vmatprep.subr.bf16.mxu0 %v3526_v44  ;;  %v3532_v45 = vld [vmem:[%s4481_s8 + $0x84] ss:$16 sps:$4 sm:$0xff]   ;;  %v3535_v56 = vld [vmem:[%s4481_s8 + $0x8c] ss:$16 sps:$4 sm:$0xff]  }
0x1185   :  { %2509 = vmatpush1.bf16.msra.mxu0 %v3524_v54  ;;  %v3567_v44 = vld [vmem:[%s4482_s9 + $0x30] sm:$0xff]   ;;  %v3569_v54 = vld [vmem:[%s4482_s9 + $0x38] sm:$0xff]  }
0x1186   :  { %3269 = vmatmul.mubr.msk.f32.vlgmr.msra.gmra.mrb[22].mxu1 %vm596_vm2, %v2038_v46  ;;  %v3530_v46 = vld [vmem:[%s4481_s8 + $0x80] ss:$16 sps:$4 sm:$0xff]   ;;  %2510 = vmatprep.subr.bf16.mxu0 %v3532_v45 }
0x1187   :  { %3287 = vmatprep.mubr.bf16.mxu1 %v2150_v57  ;;  %3272 = vmatpush3.bf16.msra.mxu1 %v3498_v61  ;;  %v3533_v57 = vld [vmem:[%s4481_s8 + $0x88] ss:$16 sps:$4 sm:$0xff]   ;;  %v3538_v61 = vld [vmem:[%s4481_s8 + $0xa4] ss:$16 sps:$4 sm:$0xff]  }
0x1188   :  { %3273 = vmatprep.subr.bf16.mxu1 %v3499_v62 }
0x1189   :  { %2511 = vmatpush1.bf16.msra.mxu0 %v3530_v46 }
0x118a   :  { %2512 = vmatprep.subr.bf16.mxu0 %v3538_v61 }
0x118b   :  { %3274 = vmatpush3.bf16.msra.mxu1 %v3499_v62  ;;  %v3541_v62 = vld [vmem:[%s4481_s8 + $0xac] ss:$16 sps:$4 sm:$0xff]  }
0x118c   :  { %3275 = vmatprep.subr.bf16.mxu1 %v3500_v63 }
0x118f   :  { %3276 = vmatpush3.bf16.msra.mxu1 %v3500_v63  ;;  %v3536_v63 = vld [vmem:[%s4481_s8 + $0xa0] ss:$16 sps:$4 sm:$0xff]  }
0x1190   :  { %3277 = vmatprep.subr.bf16.mxu1 %v3501_v13  ;;  %2513 = vmatpush1.bf16.msra.mxu0 %v3536_v63 }
0x1193   :  { %3278 = vmatpush3.bf16.msra.mxu1 %v3501_v13  ;;  %v3539_v13 = vld [vmem:[%s4481_s8 + $0xa8] ss:$16 sps:$4 sm:$0xff]  }
0x1194   :  { %3279 = vmatprep.subr.bf16.mxu1 %v3502_v7 }
0x1197   :  { %3280 = vmatpush3.bf16.msra.mxu1 %v3502_v7  ;;  %v3544_v7 = vld [vmem:[%s4481_s8 + $0xc4] ss:$16 sps:$4 sm:$0xff]  }
0x1198   :  { %3281 = vmatprep.subr.bf16.mxu1 %v3503_v0  ;;  %2514 = vmatprep.subr.bf16.mxu0 %v3544_v7 }
0x119b   :  { %3282 = vmatpush3.bf16.msra.mxu1 %v3503_v0  ;;  %v3547_v0 = vld [vmem:[%s4481_s8 + $0xcc] ss:$16 sps:$4 sm:$0xff]  }
0x119c   :  { %3283 = vmatprep.subr.bf16.mxu1 %v3504_v9 }
0x119f   :  { %3284 = vmatpush3.bf16.msra.mxu1 %v3504_v9  ;;  %v3542_v9 = vld [vmem:[%s4481_s8 + $0xc0] ss:$16 sps:$4 sm:$0xff]  }
0x11a0   :  { %3285 = vmatprep.subr.bf16.mxu1 %v3505_v14  ;;  %2515 = vmatpush1.bf16.msra.mxu0 %v3542_v9 }
0x11a3   :  { %3286 = vmatpush3.bf16.msra.mxu1 %v3505_v14  ;;  %v3545_v14 = vld [vmem:[%s4481_s8 + $0xc8] ss:$16 sps:$4 sm:$0xff]  }
0x11a4   :  { %2555 = vmatprep.subr.bf16.mxu1 %v3511_v30 }
0x1259   :  { %v3270_v8 = vpop.f32.mrb[22].mxu1 }
0x125a   :  { %v2111_v29 = vpop.f32.mrb[23].mxu1 }
0x125b   :  { %v3445_v1 = vpack.i.bf16 %v3270_v8, %v2111_v29  ;;  %v3550_v8 = vld [vmem:[%s4481_s8 + $0xe4] ss:$16 sps:$4 sm:$0xff]   ;;  %v3553_v29 = vld [vmem:[%s4481_s8 + $0xec] ss:$16 sps:$4 sm:$0xff]  }
0x125c   :  { %2516 = vmatprep.subr.bf16.mxu0 %v3550_v8 }
0x125d   :  { %3446 = vrot.lane.b32.xlu0 %v3445_v1, %s3765_s14  ;;  %v3548_v1 = vld [vmem:[%s4481_s8 + $0xe0] ss:$16 sps:$4 sm:$0xff]  }
0x125e   :  { %2517 = vmatpush1.bf16.msra.mxu0 %v3548_v1 }
0x12cf   :  { %v3447_v17 = vpop.permute.xlu0 %3446 }
0x12d0   :  { %v3449_v20 = vunpack.i.h.bf16 %v3447_v17  ;;  %v3448_v21 = vunpack.i.l.bf16 %v3447_v17 }
0x12d2   :  { %v2149_v26 = vsel %vm1313_vm4, %v2147_v51, %v3449_v20  ;;  %v2148_v27 = vsel %vm1313_vm4, %v2146_v22, %v3448_v21 }
0x12d3   :  { %v2151_v58 = vpack.c.bf16 %v2149_v26, %v2148_v27 }
0x12d5   :  { %3288 = vmatmul.mubr.bf16.vlgmr.msra.gmra.mrb[24].mxu1 %v2151_v58 }
0x12d6   :  { %2587 = vmatprep.mubr.bf16.mxu1 %v3764_v34  ;;  %2556 = vmatpush1.bf16.msra.mxu1 %v3509_v28 }
0x12d7   :  { %2557 = vmatprep.subr.bf16.mxu1 %v3517_v31 }
0x12da   :  { %2558 = vmatpush1.bf16.msra.mxu1 %v3515_v32 }
0x12db   :  { %2559 = vmatprep.subr.bf16.mxu1 %v3523_v36 }
0x12de   :  { %2560 = vmatpush1.bf16.msra.mxu1 %v3521_v4 }
0x12df   :  { %2561 = vmatprep.subr.bf16.mxu1 %v3529_v53  ;;  %v3568_v53 = vld [vmem:[%s4482_s9 + $0x78] sm:$0xff]  }
0x12e2   :  { %2562 = vmatpush1.bf16.msra.mxu1 %v3527_v55 }
0x12e3   :  { %2563 = vmatprep.subr.bf16.mxu1 %v3535_v56 }
0x12e6   :  { %2564 = vmatpush1.bf16.msra.mxu1 %v3533_v57 }
0x12e7   :  { %2565 = vmatprep.subr.bf16.mxu1 %v3541_v62 }
0x12ea   :  { %2566 = vmatpush1.bf16.msra.mxu1 %v3539_v13 }
0x12eb   :  { %2567 = vmatprep.subr.bf16.mxu1 %v3547_v0 }
0x12ee   :  { %2568 = vmatpush1.bf16.msra.mxu1 %v3545_v14 }
0x12ef   :  { %2569 = vmatprep.subr.bf16.mxu1 %v3553_v29 }
0x12f2   :  { %2570 = vmatpush1.bf16.msra.mxu1 %v3551_v2 }
0x13a8   :  { %v3289_v12 = vpop.f32.mrb[24].mxu1 }
0x13a9   :  { %v2250_v23 = vpop.f32.mrb[25].mxu1  ;;  %v4332_v48 = vadd.f32 %v3685_v47, %v3289_v12  ;;  %v3554_v12 = vld [vmem:[%s4482_s9 + $0x40] sm:$0xff]  }
0x13aa   :  { %v4315_v37 = vadd.f32 %v3682_v24, %v2250_v23  ;;  %v3290_v25 = vpop.f32.mrb[26].mxu1  ;;  %v3555_v23 = vld [vmem:[%s4482_s9] sm:$0xff]   ;;  %3099 = vmatprep.subr.bf16.mxu0 %v3554_v12  ;;  %v3556_v24 = vld [vmem:[%s4482_s9 + $0x48] sm:$0xff]  }
0x13ab   :  { %v2253_v39 = vpop.f32.mrb[27].mxu1  ;;  %v4320_v42 = vadd.f32 %v3683_v41, %v3290_v25  ;;  %v2271_v50 = vmul.f32 %v4332_v48, %v4332_v48  ;;  %v3558_v25 = vld [vmem:[%s4482_s9 + $0x50] sm:$0xff]   ;;  %v3560_v41 = vld [vmem:[%s4482_s9 + $0x58] sm:$0xff]   ;;  %v3563_v47 = vld [vmem:[%s4482_s9 + $0x20] sm:$0xff]  }
0x13ac   :  { %v4325_v49 = vadd.f32 %v3684_v43, %v2253_v39  ;;  %v2269_v5 = vmul.f32 %v4315_v37, %v4315_v37  ;;  %v3559_v39 = vld [vmem:[%s4482_s9 + $0x10] sm:$0xff]   ;;  %v3561_v43 = vld [vmem:[%s4482_s9 + $0x18] sm:$0xff]  }
0x13ad   :  { %v2272_v6 = vmul.f32 %v4320_v42, %v4320_v42 }
0x13ae   :  { %2273 = vadd.xlane.f32.xlu1 %v2269_v5  ;;  %v2270_v52 = vmul.f32 %v4325_v49, %v4325_v49  ;;  %v3562_v5 = vld [vmem:[%s4482_s9 + $0x60] sm:$0xff]  }
0x13b0   :  { %2275 = vadd.xlane.f32.xlu0 %v2270_v52  ;;  %v3564_v52 = vld [vmem:[%s4482_s9 + $0x68] sm:$0xff]  }
0x13b2   :  { %2279 = vadd.xlane.f32.xlu1 %v2272_v6  ;;  %v3565_v6 = vld [vmem:[%s4482_s9 + $0x28] sm:$0xff]  }
0x13b4   :  { %2277 = vadd.xlane.f32.xlu0 %v2271_v50  ;;  %v3566_v50 = vld [vmem:[%s4482_s9 + $0x70] sm:$0xff]  }
0x143b   :  { %v2274_v3 = vpop.xlane.xlu1 %2273 }
0x143c   :  { %v2281_v10 = vmul.f32 0.0078125, %v2274_v3 }
0x143d   :  { %v2276_v11 = vpop.xlane.xlu0 %2275 }
0x143e   :  { %v2285_v15 = vadd.f32 1e-06, %v2281_v10  ;;  %v2282_v16 = vmul.f32 0.0078125, %v2276_v11 }
0x143f   :  { %v2280_v17 = vpop.xlane.xlu1 %2279 }
0x1440   :  { %3642 = vrsqrt.f32 %v2285_v15  ;;  %v2286_v18 = vadd.f32 1e-06, %v2282_v16  ;;  %v2284_v19 = vmul.f32 0.0078125, %v2280_v17 }
0x1441   :  { %v2278_v20 = vpop.xlane.xlu0 %2277 }
0x1442   :  { %3644 = vrsqrt.f32 %v2286_v18  ;;  %v2288_v21 = vadd.f32 1e-06, %v2284_v19  ;;  %v2283_v22 = vmul.f32 0.0078125, %v2278_v20 }
0x1444   :  { %v2287_v51 = vadd.f32 1e-06, %v2283_v22  ;;  %3646 = vrsqrt.f32 %v2288_v21 }
0x1446   :  { %3648 = vrsqrt.f32 %v2287_v51 }
0x144a   :  { %v3643_v26 = vpop.eup %3642 }
0x144b   :  { %v2293_v27 = vmul.f32 %v3643_v26, %v4315_v37 }
0x144c   :  { %v3645_v58 = vpop.eup %3644 }
0x144d   :  { %v2294_v60 = vmul.f32 %v3645_v58, %v4325_v49  ;;  %v2304_v30 = vmul.f32 %v2952_v59, %v2293_v27 }
0x144e   :  { %v3647_v28 = vpop.eup %3646 }
0x144f   :  { %v2305_v33 = vmul.f32 %v2952_v59, %v2294_v60  ;;  %v2296_v35 = vmul.f32 %v3647_v28, %v4320_v42 }
0x1450   :  { %v3649_v31 = vpop.eup %3648 }
0x1451   :  { %v2308_v38 = vpack.c.bf16 %v2305_v33, %v2304_v30  ;;  %v2295_v32 = vmul.f32 %v3649_v31, %v4332_v48  ;;  %v2307_v40 = vmul.f32 %v2952_v59, %v2296_v35 }
0x1453   :  { %2535 = vmatmul.mubr.bf16.vlgmr.msra.gmra.mrb[24].mxu0 %v2308_v38  ;;  %2588 = vmatmul.mubr.bf16.vlgmr.msra.gmra.mrb[28].mxu1 %v2308_v38  ;;  %v2306_v36 = vmul.f32 %v2952_v59, %v2295_v32 }
0x1454   :  { %2544 = vmatprep.mubr.bf16.mxu0 %v3764_v34  ;;  %2597 = vmatprep.mubr.bf16.mxu1 %v3764_v34  ;;  %v3557_v34 = vld [vmem:[%s4482_s9 + $0x8] sm:$0xff]   ;;  %s3767_s9 = smov [#allocation7]  }
0x1455   :  { %v2309_v4 = vpack.c.bf16 %v2307_v40, %v2306_v36  ;;  %3100 = vmatpush3.bf16.msra.mxu0 %v3555_v23  ;;  %s2866_s22 = sshll.u32 %s3767_s9, 4  ;;  %s2867_s22 = int_to_ptr.vmem [resolvable:$true] %s2866_s22 }
0x1456   :  { %3101 = vmatprep.subr.bf16.mxu0 %v3556_v24  ;;  %s3730_s23 = scalar_lea.vmem %s2867_s22, 512  ;;  %p3735_p3 = scmp.lt.s32.totalorder %s2867_s22, %s2867_s22 }
0x1457   :  { %p3731_p2 = scmp.ne.s32.totalorder %s2867_s22, %s3730_s23  ;;  %p3736_p4 = scmp.lt.s32.totalorder %s3730_s23, %s3730_s23 }
0x1459   :  { %3102 = vmatpush3.bf16.msra.mxu0 %v3557_v34  ;;  %p3737_p5 = por %p3736_p4, %p3735_p3 }
0x145a   :  { %3103 = vmatprep.subr.bf16.mxu0 %v3558_v25 }
0x145b   :  { %2545 = vmatmul.mubr.bf16.gmra.mrb[28].mxu0 %v2309_v4  ;;  %2598 = vmatmul.mubr.bf16.gmra.mrb[32].mxu1 %v2309_v4  ;;  %p3738_p6 = pnand %p3737_p5, %p3731_p2 }
0x145d   :  { %3104 = vmatpush3.bf16.msra.mxu0 %v3559_v39 }
0x145e   :  { %3105 = vmatprep.subr.bf16.mxu0 %v3560_v41 }
0x1461   :  { %3106 = vmatpush3.bf16.msra.mxu0 %v3561_v43 }
0x1462   :  { %3107 = vmatprep.subr.bf16.mxu0 %v3562_v5 }
0x1465   :  { %3108 = vmatpush3.bf16.msra.mxu0 %v3563_v47 }
0x1466   :  { %3109 = vmatprep.subr.bf16.mxu0 %v3564_v52 }
0x1469   :  { %3110 = vmatpush3.bf16.msra.mxu0 %v3565_v6 }
0x146a   :  { %3111 = vmatprep.subr.bf16.mxu0 %v3566_v50 }
0x146d   :  { %3112 = vmatpush3.bf16.msra.mxu0 %v3567_v44 }
0x146e   :  { %3113 = vmatprep.subr.bf16.mxu0 %v3568_v53 }
0x1471   :  { %3114 = vmatpush3.bf16.msra.mxu0 %v3569_v54 }
0x1526   :  { %v2536_v55 = vpop.f32.mrb[24].mxu0  ;;  %v2589_v45 = vpop.f32.mrb[28].mxu1 }
0x1527   :  { %v2985_v56 = vmul.f32 -1.442695, %v2536_v55  ;;  %v2538_v46 = vpop.f32.mrb[25].mxu0  ;;  %v2591_v57 = vpop.f32.mrb[29].mxu1 }
0x1528   :  { %v2986_v61 = vmul.f32 -1.442695, %v2538_v46  ;;  %v2540_v62 = vpop.f32.mrb[26].mxu0  ;;  %v2593_v63 = vpop.f32.mrb[30].mxu1 }
0x1529   :  { %3650 = vpow2.f32 %v2985_v56  ;;  %v2987_v13 = vmul.f32 -1.442695, %v2540_v62  ;;  %v2542_v7 = vpop.f32.mrb[27].mxu0  ;;  %v2595_v0 = vpop.f32.mrb[31].mxu1 }
0x152a   :  { %3652 = vpow2.f32 %v2986_v61  ;;  %v2988_v9 = vmul.f32 -1.442695, %v2542_v7 }
0x152b   :  { %3654 = vpow2.f32 %v2987_v13 }
0x152c   :  { %3656 = vpow2.f32 %v2988_v9 }
0x152e   :  { %v2546_v14 = vpop.f32.mrb[28].mxu0  ;;  %v2599_v8 = vpop.f32.mrb[32].mxu1 }
0x152f   :  { %v2989_v29 = vmul.f32 -1.442695, %v2546_v14  ;;  %v2548_v1 = vpop.f32.mrb[29].mxu0  ;;  %v2601_v2 = vpop.f32.mrb[33].mxu1 }
0x1530   :  { %v2990_v3 = vmul.f32 -1.442695, %v2548_v1  ;;  %v2550_v10 = vpop.f32.mrb[30].mxu0  ;;  %v2603_v11 = vpop.f32.mrb[34].mxu1 }
0x1531   :  { %3658 = vpow2.f32 %v2989_v29  ;;  %v2991_v15 = vmul.f32 -1.442695, %v2550_v10  ;;  %v2552_v16 = vpop.f32.mrb[31].mxu0  ;;  %v2605_v17 = vpop.f32.mrb[35].mxu1 }
0x1532   :  { %3660 = vpow2.f32 %v2990_v3  ;;  %v2992_v18 = vmul.f32 -1.442695, %v2552_v16 }
0x1533   :  { %v3651_v19 = vpop.eup %3650  ;;  %3662 = vpow2.f32 %v2991_v15 }
0x1534   :  { %v3653_v20 = vpop.eup %3652  ;;  %v2632_v21 = vadd.f32 1.0, %v3651_v19  ;;  %3664 = vpow2.f32 %v2992_v18 }
0x1535   :  { %v3655_v22 = vpop.eup %3654  ;;  %v2633_v51 = vadd.f32 1.0, %v3653_v20 }
0x1536   :  { %v3657_v26 = vpop.eup %3656  ;;  %3666 = vrcp.f32 %v2632_v21  ;;  %v2634_v27 = vadd.f32 1.0, %v3655_v22 }
0x1537   :  { %3668 = vrcp.f32 %v2633_v51  ;;  %v2635_v58 = vadd.f32 1.0, %v3657_v26 }
0x1538   :  { %3670 = vrcp.f32 %v2634_v27 }
0x1539   :  { %3672 = vrcp.f32 %v2635_v58 }
0x153b   :  { %v3659_v59 = vpop.eup %3658 }
0x153c   :  { %v3661_v60 = vpop.eup %3660  ;;  %v2636_v28 = vadd.f32 1.0, %v3659_v59 }
0x153d   :  { %v3663_v30 = vpop.eup %3662  ;;  %v2637_v33 = vadd.f32 1.0, %v3661_v60 }
0x153e   :  { %v3665_v31 = vpop.eup %3664  ;;  %3674 = vrcp.f32 %v2636_v28  ;;  %v2638_v38 = vadd.f32 1.0, %v3663_v30 }
0x153f   :  { %3676 = vrcp.f32 %v2637_v33  ;;  %v2639_v32 = vadd.f32 1.0, %v3665_v31 }
0x1540   :  { %v3667_v35 = vpop.eup %3666  ;;  %3678 = vrcp.f32 %v2638_v38 }
0x1541   :  { %v3669_v36 = vpop.eup %3668  ;;  %v2656_v40 = vmul.f32 %v3667_v35, %v2536_v55  ;;  %3680 = vrcp.f32 %v2639_v32 }
0x1542   :  { %v3671_v4 = vpop.eup %3670  ;;  %v2657_v12 = vmul.f32 %v3669_v36, %v2538_v46 }
0x1543   :  { %v3673_v23 = vpop.eup %3672  ;;  %v2664_v24 = vmul.f32 %v2656_v40, %v2589_v45  ;;  %v2658_v34 = vmul.f32 %v3671_v4, %v2540_v62 }
0x1544   :  { %v2665_v25 = vmul.f32 %v2657_v12, %v2591_v57  ;;  %v2659_v39 = vmul.f32 %v3673_v23, %v2542_v7 }
0x1545   :  { %v2666_v41 = vmul.f32 %v2658_v34, %v2593_v63 }
0x1546   :  { %v2667_v43 = vmul.f32 %v2659_v39, %v2595_v0 }
0x1547   :  { %v2672_v5 = vpack.c.bf16 %v2666_v41, %v2664_v24 }
0x1548   :  { %v3675_v47 = vpop.eup %3674  ;;  %v2673_v52 = vpack.c.bf16 %v2667_v43, %v2665_v25 }
0x1549   :  { %v3677_v6 = vpop.eup %3676  ;;  %v2660_v50 = vmul.f32 %v3675_v47, %v2546_v14 }
0x154a   :  { %v3679_v44 = vpop.eup %3678  ;;  %v2661_v53 = vmul.f32 %v3677_v6, %v2548_v1  ;;  %2836 = vmatprep.mubr.bf16.mxu0 %v2673_v52 }
0x154b   :  { %v3681_v54 = vpop.eup %3680  ;;  %v2668_v55 = vmul.f32 %v2660_v50, %v2599_v8  ;;  %v2662_v56 = vmul.f32 %v3679_v44, %v2550_v10  ;;  %2837 = vmatmul.mubr.bf16.vlgmr.msra.gmra.mrb[32].mxu0 %v2672_v5 }
0x154c   :  { %v2669_v46 = vmul.f32 %v2661_v53, %v2601_v2  ;;  %v2663_v61 = vmul.f32 %v3681_v54, %v2552_v16 }
0x154d   :  { %v2670_v45 = vmul.f32 %v2662_v56, %v2603_v11 }
0x154e   :  { %v2671_v62 = vmul.f32 %v2663_v61, %v2605_v17 }
0x154f   :  { %v2674_v57 = vpack.c.bf16 %v2670_v45, %v2668_v55 }
0x1550   :  { %v2675_v13 = vpack.c.bf16 %v2671_v62, %v2669_v46 }
0x1552   :  { %2844 = vmatprep.mubr.bf16.mxu0 %v2675_v13 }
0x1553   :  { %2845 = vmatmul.mubr.bf16.gmra.mrb[36].mxu0 %v2674_v57 }
0x161e   :  { %v3115_v63 = vpop.f32.mrb[32].mxu0 }
0x161f   :  { %v3116_v7 = vpop.f32.mrb[33].mxu0 }
0x1620   :  { %v3117_v0 = vadd.f32 %v3116_v7, %v3115_v63  ;;  %v3118_v9 = vpop.f32.mrb[34].mxu0 }
0x1621   :  { %v3119_v14 = vpop.f32.mrb[35].mxu0 }
0x1622   :  { %v2853_v29 = vadd.f32 %v3117_v0, %v4315_v37  ;;  %v3120_v1 = vadd.f32 %v3119_v14, %v3118_v9 }
0x1624   :  { %2857 = vst [vmem:[#allocation7] sm:$0xff] %v2853_v29  ;;  %v2854_v8 = vadd.f32 %v3120_v1, %v4325_v49 }
0x1626   :  { %2858 = vst [vmem:[#allocation7 + $0x8] sm:$0xff] %v2854_v8  ;;  %v3121_v2 = vpop.f32.mrb[36].mxu0 }
0x1627   :  { %v3122_v3 = vpop.f32.mrb[37].mxu0 }
0x1628   :  { %v3123_v10 = vadd.f32 %v3122_v3, %v3121_v2  ;;  %v3124_v11 = vpop.f32.mrb[38].mxu0 }
0x1629   :  { %v3125_v15 = vpop.f32.mrb[39].mxu0 }
0x162a   :  { %v2855_v16 = vadd.f32 %v3123_v10, %v4332_v48  ;;  %v3126_v17 = vadd.f32 %v3125_v15, %v3124_v11 }
0x162c   :  { %2859 = vst [vmem:[#allocation7 + $0x10] sm:$0xff] %v2855_v16  ;;  %v2856_v18 = vadd.f32 %v3126_v17, %v4320_v42 }
0x162e   :  { %2860 = vst [vmem:[#allocation7 + $0x18] sm:$0xff] %v2856_v18 }
0x162f   :  { %3741 = shalt.err (!%p3738_p6)
}
0x1630   :  { %s3742_s6 = scalar_lea.hbm %s4483_s10, 512 }
0x1631   :  { %p3743_p7 = scmp.ne.s32.totalorder %s4483_s10, %s3742_s6  ;;  %p3746_p8 = scmp.lt.u32.totalorder %s3742_s6, %s4483_s10 }
0x1633   :  { %p3748_p9 = pnand %p3746_p8, %p3743_p7 }
0x1635   :  { %3751 = shalt.err (!%p3748_p9)
}
0x1636   :  { %s3768_s4 = smov 128   ;;  %s3769_s28 = smov 8  }
0x1637   :  { %2872 = dma.vmem_to_hbm [thread:$0]  %s2867_s22, 512, %s4483_s10, [#allocation4], %s3768_s4, %s3768_s4, %s3769_s28  }
0x1638   :  { %3756 = dma.done.wait [#allocation4], 512  }
0x1639   :  { %3757 = vsyncadd [#allocation4], 4294966784 }
0x163a   :  { %2876 = vsyncpa [#allocation3], 1 }
0x163b   :  { %2877 = vsyncpa [#allocation6], 1 }
0x163c   :  { %2878 = vsyncpa [#allocation4], 1 }

</bundles_post_ra>
